<compile_context>
chip_gen: v7x
topology: tpu7x:2x2x1
jax: 0.10.0
libtpu: 0.0.40
codegen_flags: <defaults>
</compile_context>

<pallas_src>
import jax
import jax.numpy as jnp
import numpy as np
from jax.experimental import pallas as pl
from jax.experimental.pallas import tpu as pltpu

# ----------------------------- hyper-parameters ------------------------------
CHANNELS = 4            # must be even
HALF = CHANNELS // 2
HIDDEN = 32
KERNEL_SIZE = 3         # must be odd
DILATION_RATE = 2
N_LAYERS = 3
B = 2
T = 16

assert CHANNELS % 2 == 0
assert KERNEL_SIZE % 2 == 1

HALF_K = (KERNEL_SIZE - 1) // 2
NV = B * T                                        # valid folded columns
LANES = max(128, ((NV + 127) // 128) * 128)       # lane-dense slab width
MXU_DTYPE = jnp.bfloat16                          # MXU operand dtype (f32 accum)

assert LANES % 128 == 0 and NV <= LANES


# --------------------------------- kernel ------------------------------------
def coupling_kernel(x_ref, wpre_ref, bpre_ref, win_ref, bin_ref, wrs_ref,
                    brs_ref, wpost_ref, bpost_ref,        # inputs
                    y_ref, logdet_ref):                   # outputs
    x0 = x_ref[:HALF, :]                     # (HALF, LANES) f32
    x1 = x_ref[HALF:, :]

    # Lane position within its length-T segment.  A tap whose source falls
    # outside [0, T) of the SAME segment is zeroed: this implements the conv's
    # zero 'same' padding and stops leakage between the folded batch elements
    # (and from the zero pad lanes beyond column B*T).
    q = jax.lax.broadcasted_iota(jnp.int32, (HIDDEN, LANES), 1) % T

    # pre: 1x1 conv == (HIDDEN, HALF) @ (HALF, LANES)
    h = jnp.dot(wpre_ref[...], x0.astype(MXU_DTYPE),
                preferred_element_type=jnp.float32) + bpre_ref[...]

    out = jnp.zeros((HIDDEN, LANES), jnp.float32)
    # Static unroll: n_layers is small here.
    # TODO(synk): switch to lax.fori_loop with dynamic win_ref/wrs_ref indexing
    # for realistic SoVits layer counts (4-16) to bound code size / vreg ranges.
    for i in range(N_LAYERS):
        dil = DILATION_RATE ** i

        # Dilated 'same' conv as K accumulating MXU matmuls over rolled+masked
        # in-register views of h: no VMEM round-trip, shifts on the XLU slot.
        x_in = None
        for k in range(KERNEL_SIZE):
            off = (k - HALF_K) * dil
            if off == 0:
                tap = h
            else:
                rolled = pltpu.roll(h, shift=(-off) % LANES, axis=1)
                valid = jnp.logical_and(q + off >= 0, q + off < T)
                tap = jnp.where(valid, rolled, 0.0)
            d = jnp.dot(win_ref[i * KERNEL_SIZE + k], tap.astype(MXU_DTYPE),
                        preferred_element_type=jnp.float32)
            x_in = d if x_in is None else x_in + d
        x_in = x_in + bin_ref[i]

        # fused_add_tanh_sigmoid_multiply (g == 0 since gin_channels == 0);
        # dropout p=0 -> no-op.  Elementwise math stays f32.
        acts = jnp.tanh(x_in[:HIDDEN, :]) * jax.nn.sigmoid(x_in[HIDDEN:, :])

        # res/skip 1x1 conv (last layer's weights zero-padded to 2*HIDDEN rows)
        rs = jnp.dot(wrs_ref[i], acts.astype(MXU_DTYPE),
                     preferred_element_type=jnp.float32) + brs_ref[i]
        if i < N_LAYERS - 1:
            h = h + rs[:HIDDEN, :]
            out = out + rs[HIDDEN:, :]
        else:
            out = out + rs[:HIDDEN, :]

    # post: 1x1 conv -> (m, logs); coupling affine + logdet in f32
    stats = jnp.dot(wpost_ref[...], out.astype(MXU_DTYPE),
                    preferred_element_type=jnp.float32) + bpost_ref[...]
    m = stats[:HALF, :]
    logs = stats[HALF:, :]

    # Lane-dense full-width stores (no concatenate on the output path).
    y_ref[:HALF, :] = x0
    y_ref[HALF:, :] = m + x1 * jnp.exp(logs)

    # Per-batch logdet = sum over that element's T valid columns.
    # TODO(synk): this module variant takes no x_mask; padded/variable-length
    # sequences would need logs masked before this reduction.
    for b in range(B):
        logdet_ref[b] = jnp.sum(logs[:, b * T:(b + 1) * T])


# -------------------------------- wrapper -------------------------------------
@jax.jit
def residual_coupling_forward(x_nct, wpre, bpre, win, bin_, wrs, brs,
                              wpost, bpost):
    """x_nct: (B, C, T) float32 (PyTorch layout). Returns (x_out (B,C,T), logdet (B,))."""
    # Fold batch into the lane axis and zero-pad to a 128-lane slab (layout
    # plumbing on the XLA side so the kernel is fully lane-dense).
    x_fold = jnp.transpose(x_nct, (1, 0, 2)).reshape(CHANNELS, NV)
    x_fold = jnp.pad(x_fold, ((0, 0), (0, LANES - NV)))

    y_fold, logdet = pl.pallas_call(
        coupling_kernel,
        out_shape=(
            jax.ShapeDtypeStruct((CHANNELS, LANES), jnp.float32),
            jax.ShapeDtypeStruct((B,), jnp.float32),
        ),
        grid_spec=pltpu.PrefetchScalarGridSpec(
            num_scalar_prefetch=0,
            grid=(1,),       # whole (toy) problem in one lane-dense block; at
                             # production, tile T (multiples of 128) on a
                             # 'parallel' axis for v7x's two TensorCores.
            in_specs=[
                pl.BlockSpec((CHANNELS, LANES), lambda i: (0, 0)),
                pl.BlockSpec((HIDDEN, HALF), lambda i: (0, 0)),
                pl.BlockSpec((HIDDEN, 1), lambda i: (0, 0)),
                pl.BlockSpec((N_LAYERS * KERNEL_SIZE, 2 * HIDDEN, HIDDEN),
                             lambda i: (0, 0, 0)),
                pl.BlockSpec((N_LAYERS, 2 * HIDDEN, 1), lambda i: (0, 0, 0)),
                pl.BlockSpec((N_LAYERS, 2 * HIDDEN, HIDDEN), lambda i: (0, 0, 0)),
                pl.BlockSpec((N_LAYERS, 2 * HIDDEN, 1), lambda i: (0, 0, 0)),
                pl.BlockSpec((CHANNELS, HIDDEN), lambda i: (0, 0)),
                pl.BlockSpec((CHANNELS, 1), lambda i: (0, 0)),
            ],
            out_specs=[
                pl.BlockSpec((CHANNELS, LANES), lambda i: (0, 0)),
                pl.BlockSpec(memory_space=pltpu.SMEM),
            ],
        ),
        compiler_params=pltpu.CompilerParams(
            dimension_semantics=("arbitrary",)),
    )(x_fold, wpre, bpre, win, bin_, wrs, brs, wpost, bpost)

    # Unfold back to the PyTorch (B, C, T) layout.
    y = y_fold[:, :NV].reshape(CHANNELS, B, T).transpose(1, 0, 2)
    return y, logdet


# ---------------------- deterministic parameter init --------------------------
def init_params(key, zero_post=True):
    ks = jax.random.split(key, 4 + 4 * N_LAYERS)
    it = iter(ks)
    p = {}
    # pre: Conv1d(HALF -> HIDDEN, k=1)
    p["pre_w"] = 0.1 * jax.random.normal(next(it), (HIDDEN, HALF, 1), jnp.float32)
    p["pre_b"] = 0.1 * jax.random.normal(next(it), (HIDDEN,), jnp.float32)
    # WN layers (weight_norm at init == raw weights)
    p["in_w"], p["in_b"], p["rs_w"], p["rs_b"] = [], [], [], []
    for i in range(N_LAYERS):
        p["in_w"].append(0.1 * jax.random.normal(
            next(it), (2 * HIDDEN, HIDDEN, KERNEL_SIZE), jnp.float32))
        p["in_b"].append(0.1 * jax.random.normal(next(it), (2 * HIDDEN,), jnp.float32))
        rs_out = 2 * HIDDEN if i < N_LAYERS - 1 else HIDDEN
        p["rs_w"].append(0.1 * jax.random.normal(
            next(it), (rs_out, HIDDEN, 1), jnp.float32))
        p["rs_b"].append(0.1 * jax.random.normal(next(it), (rs_out,), jnp.float32))
    # post: the module zero-initializes these; zero_post=False lets the test
    # exercise the exp/coupling/logdet path with non-trivial logs.
    if zero_post:
        p["post_w"] = jnp.zeros((CHANNELS, HIDDEN, 1), jnp.float32)
        p["post_b"] = jnp.zeros((CHANNELS,), jnp.float32)
    else:
        p["post_w"] = 0.1 * jax.random.normal(next(it), (CHANNELS, HIDDEN, 1), jnp.float32)
        p["post_b"] = 0.1 * jax.random.normal(next(it), (CHANNELS,), jnp.float32)
    return p


def pack_params_for_kernel(p):
    """Pack PyTorch-shaped conv weights for the lane-folded W @ X kernel.

    Matmul weights are stored in MXU_DTYPE (bf16: full-rate MXU on v6e/v7x and
    half the weight VMEM); biases stay f32 and are added after the f32
    accumulation.
    """
    wpre = p["pre_w"][:, :, 0].astype(MXU_DTYPE)                  # (H, HALF)
    bpre = p["pre_b"].reshape(HIDDEN, 1)
    # One (2H, H) weight per (layer, tap): each tap is one accumulating matmul.
    win = jnp.stack([p["in_w"][i][:, :, k]
                     for i in range(N_LAYERS)
                     for k in range(KERNEL_SIZE)]).astype(MXU_DTYPE)  # (L*K, 2H, H)
    bin_ = jnp.stack([b.reshape(2 * HIDDEN, 1) for b in p["in_b"]])   # (L, 2H, 1)
    wrs_list, brs_list = [], []
    for i in range(N_LAYERS):
        w = p["rs_w"][i][:, :, 0]                                 # (rs_out, HIDDEN)
        bvec = p["rs_b"][i]
        if w.shape[0] < 2 * HIDDEN:                               # pad last layer rows
            w = jnp.pad(w, ((0, 2 * HIDDEN - w.shape[0]), (0, 0)))
            bvec = jnp.pad(bvec, (0, 2 * HIDDEN - bvec.shape[0]))
        wrs_list.append(w)
        brs_list.append(bvec.reshape(2 * HIDDEN, 1))
    wrs = jnp.stack(wrs_list).astype(MXU_DTYPE)                   # (L, 2H, H)
    brs = jnp.stack(brs_list)                                     # (L, 2H, 1) f32
    wpost = p["post_w"][:, :, 0].astype(MXU_DTYPE)                # (C, H)
    bpost = p["post_b"].reshape(CHANNELS, 1)
    return wpre, bpre, win, bin_, wrs, brs, wpost, bpost


# --------------------------- pure-JAX reference --------------------------------
def conv1d_ref(x, w, b, dilation=1, padding=0):
    y = jax.lax.conv_general_dilated(
        x, w, window_strides=(1,), padding=[(padding, padding)],
        rhs_dilation=(dilation,), dimension_numbers=("NCH", "OIH", "NCH"),
        precision=jax.lax.Precision.HIGHEST)
    return y + b[None, :, None]


def reference_forward(x, p):
    x0, x1 = x[:, :HALF], x[:, HALF:]
    h = conv1d_ref(x0, p["pre_w"], p["pre_b"])
    out = jnp.zeros_like(h)
    for i in range(N_LAYERS):
        dil = DILATION_RATE ** i
        pad = dil * (KERNEL_SIZE - 1) // 2
        x_in = conv1d_ref(h, p["in_w"][i], p["in_b"][i], dilation=dil, padding=pad)
        acts = jnp.tanh(x_in[:, :HIDDEN]) * jax.nn.sigmoid(x_in[:, HIDDEN:])
        rs = conv1d_ref(acts, p["rs_w"][i], p["rs_b"][i])
        if i < N_LAYERS - 1:
            h = h + rs[:, :HIDDEN]
            out = out + rs[:, HIDDEN:]
        else:
            out = out + rs
    stats = conv1d_ref(out, p["post_w"], p["post_b"])
    m, logs = stats[:, :HALF], stats[:, HALF:]
    x1n = m + x1 * jnp.exp(logs)
    return jnp.concatenate([x0, x1n], axis=1), jnp.sum(logs, axis=(1, 2))


# ---------------------------------- main ---------------------------------------
if __name__ == "__main__":
    key = jax.random.PRNGKey(0)
    k_x, k_p = jax.random.split(key)
    x = jax.random.normal(k_x, (B, CHANNELS, T), jnp.float32)  # PyTorch NCT layout

    # Non-zero post weights so the exp(logs)/coupling/logdet path is exercised
    # (the module's own init zeroes them -> logs == 0).
    params = init_params(k_p, zero_post=False)
    packed = pack_params_for_kernel(params)

    y, logdet = residual_coupling_forward(x, *packed)
    jax.block_until_ready((y, logdet))

    # Tolerances account for bf16 MXU operands in the kernel vs the f32
    # reference; the coupling/exp/logdet math itself is f32 in both.
    y_ref, logdet_ref = reference_forward(x, params)
    np.testing.assert_allclose(np.asarray(y), np.asarray(y_ref),
                               rtol=5e-2, atol=5e-2)
    np.testing.assert_allclose(np.asarray(logdet), np.asarray(logdet_ref),
                               rtol=5e-2, atol=1e-1)

    print("KERNEL_OK")
</pallas_src>

<mosaic_0001>
module attributes {stable_mosaic.version = 11 : i64} {
  func.func @coupling_kernel(%arg0: i32, %arg1: memref<4x128xf32, #tpu.memory_space<vmem>>, %arg2: memref<32x2xbf16, #tpu.memory_space<vmem>>, %arg3: memref<32x1xf32, #tpu.memory_space<vmem>>, %arg4: memref<9x64x32xbf16, #tpu.memory_space<vmem>>, %arg5: memref<3x64x1xf32, #tpu.memory_space<vmem>>, %arg6: memref<3x64x32xbf16, #tpu.memory_space<vmem>>, %arg7: memref<3x64x1xf32, #tpu.memory_space<vmem>>, %arg8: memref<4x32xbf16, #tpu.memory_space<vmem>>, %arg9: memref<4x1xf32, #tpu.memory_space<vmem>>, %arg10: memref<4x128xf32, #tpu.memory_space<vmem>>, %arg11: memref<2xf32, #tpu.memory_space<smem>>) attributes {dimension_semantics = [#tpu.dimension_semantics<arbitrary>], iteration_bounds = array<i64: 1>, scalar_prefetch = 0 : i64, scratch_operands = 0 : i64, tpu.core_type = #tpu.core_type<tc>, window_params = [{pipeline_mode = #tpu.pipeline_mode<synchronous>, transform_indices = @transform_0, window_bounds = array<i64: 4, 128>}, {pipeline_mode = #tpu.pipeline_mode<synchronous>, transform_indices = @transform_1, window_bounds = array<i64: 32, 2>}, {pipeline_mode = #tpu.pipeline_mode<synchronous>, transform_indices = @transform_2, window_bounds = array<i64: 32, 1>}, {pipeline_mode = #tpu.pipeline_mode<synchronous>, transform_indices = @transform_3, window_bounds = array<i64: 9, 64, 32>}, {pipeline_mode = #tpu.pipeline_mode<synchronous>, transform_indices = @transform_4, window_bounds = array<i64: 3, 64, 1>}, {pipeline_mode = #tpu.pipeline_mode<synchronous>, transform_indices = @transform_5, window_bounds = array<i64: 3, 64, 32>}, {pipeline_mode = #tpu.pipeline_mode<synchronous>, transform_indices = @transform_6, window_bounds = array<i64: 3, 64, 1>}, {pipeline_mode = #tpu.pipeline_mode<synchronous>, transform_indices = @transform_7, window_bounds = array<i64: 4, 32>}, {pipeline_mode = #tpu.pipeline_mode<synchronous>, transform_indices = @transform_8, window_bounds = array<i64: 4, 1>}, {pipeline_mode = #tpu.pipeline_mode<synchronous>, transform_indices = @transform_9, window_bounds = array<i64: 4, 128>}, {transform_indices = @transform_10, window_bounds = array<i64: 2>}]} {
    %c0 = arith.constant 0 : index
    %c0_0 = arith.constant 0 : index
    %0 = vector.load %arg1[%c0, %c0_0] : memref<4x128xf32, #tpu.memory_space<vmem>>, vector<2x128xf32>
    %c2 = arith.constant 2 : index
    %c0_1 = arith.constant 0 : index
    %1 = vector.load %arg1[%c2, %c0_1] : memref<4x128xf32, #tpu.memory_space<vmem>>, vector<2x128xf32>
    %2 = tpu.iota {dimensions = array<i32: 1>} : vector<32x128xi32>
    %c16_i32 = arith.constant 16 : i32
    %c0_i32 = arith.constant 0 : i32
    %3 = arith.cmpi eq, %c16_i32, %c0_i32 : i32
    %c1_i32 = arith.constant 1 : i32
    %4 = arith.select %3, %c1_i32, %c16_i32 : i32
    %5 = vector.broadcast %4 : i32 to vector<32x128xi32>
    %6 = arith.remsi %2, %5 : vector<32x128xi32>
    %c0_i32_2 = arith.constant 0 : i32
    %7 = vector.broadcast %c0_i32_2 : i32 to vector<32x128xi32>
    %8 = arith.cmpi ne, %6, %7 : vector<32x128xi32>
    %c0_i32_3 = arith.constant 0 : i32
    %9 = vector.broadcast %c0_i32_3 : i32 to vector<32x128xi32>
    %10 = arith.cmpi slt, %6, %9 : vector<32x128xi32>
    %c0_i32_4 = arith.constant 0 : i32
    %11 = arith.cmpi slt, %4, %c0_i32_4 : i32
    %12 = vector.broadcast %11 : i1 to vector<32x128xi1>
    %13 = vector.broadcast %12 : vector<32x128xi1> to vector<32x128xi1>
    %14 = arith.xori %10, %13 : vector<32x128xi1>
    %15 = arith.andi %14, %8 : vector<32x128xi1>
    %16 = vector.broadcast %4 : i32 to vector<32x128xi32>
    %17 = arith.addi %6, %16 : vector<32x128xi32>
    %18 = arith.select %15, %17, %6 : vector<32x128xi1>, vector<32x128xi32>
    %c0_5 = arith.constant 0 : index
    %c0_6 = arith.constant 0 : index
    %19 = vector.load %arg2[%c0_5, %c0_6] : memref<32x2xbf16, #tpu.memory_space<vmem>>, vector<32x2xbf16>
    %20 = arith.truncf %0 : vector<2x128xf32> to vector<2x128xbf16>
    %cst = arith.constant dense<0.000000e+00> : vector<32x128xf32>
    %21 = tpu.matmul %19, %20, %cst {dimension_numbers = #tpu.dot_dimension_numbers<[1], [0], [0], [1], [0, 0, 1, 1], [], []>} : vector<32x2xbf16>, vector<2x128xbf16>, vector<32x128xf32> -> vector<32x128xf32>
    %c0_7 = arith.constant 0 : index
    %c0_8 = arith.constant 0 : index
    %22 = vector.load %arg3[%c0_7, %c0_8] : memref<32x1xf32, #tpu.memory_space<vmem>>, vector<32x1xf32>
    %23 = vector.broadcast %22 : vector<32x1xf32> to vector<32x128xf32>
    %24 = arith.addf %21, %23 : vector<32x128xf32>
    %cst_9 = arith.constant 0.000000e+00 : f32
    %25 = vector.broadcast %cst_9 : f32 to vector<32x128xf32>
    %c1_i32_10 = arith.constant 1 : i32
    %26 = tpu.dynamic_rotate %24 by %c1_i32_10 dim 1 : vector<32x128xf32>, i32 -> vector<32x128xf32>
    %c-1_i32 = arith.constant -1 : i32
    %27 = vector.broadcast %c-1_i32 : i32 to vector<32x128xi32>
    %28 = arith.addi %18, %27 : vector<32x128xi32>
    %c0_i32_11 = arith.constant 0 : i32
    %29 = vector.broadcast %c0_i32_11 : i32 to vector<32x128xi32>
    %30 = arith.cmpi sge, %28, %29 : vector<32x128xi32>
    %c-1_i32_12 = arith.constant -1 : i32
    %31 = vector.broadcast %c-1_i32_12 : i32 to vector<32x128xi32>
    %32 = arith.addi %18, %31 : vector<32x128xi32>
    %c16_i32_13 = arith.constant 16 : i32
    %33 = vector.broadcast %c16_i32_13 : i32 to vector<32x128xi32>
    %34 = arith.cmpi slt, %32, %33 : vector<32x128xi32>
    %35 = arith.andi %30, %34 : vector<32x128xi1>
    %cst_14 = arith.constant 0.000000e+00 : f32
    %36 = vector.broadcast %cst_14 : f32 to vector<32x128xf32>
    %37 = arith.select %35, %26, %36 : vector<32x128xi1>, vector<32x128xf32>
    %c0_15 = arith.constant 0 : index
    %c0_16 = arith.constant 0 : index
    %c0_17 = arith.constant 0 : index
    %38 = vector.load %arg4[%c0_15, %c0_16, %c0_17] : memref<9x64x32xbf16, #tpu.memory_space<vmem>>, vector<1x64x32xbf16>
    %39 = vector.shape_cast %38 : vector<1x64x32xbf16> to vector<64x32xbf16>
    %40 = arith.truncf %37 : vector<32x128xf32> to vector<32x128xbf16>
    %cst_18 = arith.constant dense<0.000000e+00> : vector<64x128xf32>
    %41 = tpu.matmul %39, %40, %cst_18 {dimension_numbers = #tpu.dot_dimension_numbers<[1], [0], [0], [1], [0, 0, 1, 1], [], []>} : vector<64x32xbf16>, vector<32x128xbf16>, vector<64x128xf32> -> vector<64x128xf32>
    %c1 = arith.constant 1 : index
    %c0_19 = arith.constant 0 : index
    %c0_20 = arith.constant 0 : index
    %42 = vector.load %arg4[%c1, %c0_19, %c0_20] : memref<9x64x32xbf16, #tpu.memory_space<vmem>>, vector<1x64x32xbf16>
    %43 = vector.shape_cast %42 : vector<1x64x32xbf16> to vector<64x32xbf16>
    %44 = arith.truncf %24 : vector<32x128xf32> to vector<32x128xbf16>
    %cst_21 = arith.constant dense<0.000000e+00> : vector<64x128xf32>
    %45 = tpu.matmul %43, %44, %cst_21 {dimension_numbers = #tpu.dot_dimension_numbers<[1], [0], [0], [1], [0, 0, 1, 1], [], []>} : vector<64x32xbf16>, vector<32x128xbf16>, vector<64x128xf32> -> vector<64x128xf32>
    %46 = arith.addf %41, %45 : vector<64x128xf32>
    %c127_i32 = arith.constant 127 : i32
    %47 = tpu.dynamic_rotate %24 by %c127_i32 dim 1 : vector<32x128xf32>, i32 -> vector<32x128xf32>
    %c1_i32_22 = arith.constant 1 : i32
    %48 = vector.broadcast %c1_i32_22 : i32 to vector<32x128xi32>
    %49 = arith.addi %18, %48 : vector<32x128xi32>
    %c0_i32_23 = arith.constant 0 : i32
    %50 = vector.broadcast %c0_i32_23 : i32 to vector<32x128xi32>
    %51 = arith.cmpi sge, %49, %50 : vector<32x128xi32>
    %c1_i32_24 = arith.constant 1 : i32
    %52 = vector.broadcast %c1_i32_24 : i32 to vector<32x128xi32>
    %53 = arith.addi %18, %52 : vector<32x128xi32>
    %c16_i32_25 = arith.constant 16 : i32
    %54 = vector.broadcast %c16_i32_25 : i32 to vector<32x128xi32>
    %55 = arith.cmpi slt, %53, %54 : vector<32x128xi32>
    %56 = arith.andi %51, %55 : vector<32x128xi1>
    %cst_26 = arith.constant 0.000000e+00 : f32
    %57 = vector.broadcast %cst_26 : f32 to vector<32x128xf32>
    %58 = arith.select %56, %47, %57 : vector<32x128xi1>, vector<32x128xf32>
    %c2_27 = arith.constant 2 : index
    %c0_28 = arith.constant 0 : index
    %c0_29 = arith.constant 0 : index
    %59 = vector.load %arg4[%c2_27, %c0_28, %c0_29] : memref<9x64x32xbf16, #tpu.memory_space<vmem>>, vector<1x64x32xbf16>
    %60 = vector.shape_cast %59 : vector<1x64x32xbf16> to vector<64x32xbf16>
    %61 = arith.truncf %58 : vector<32x128xf32> to vector<32x128xbf16>
    %cst_30 = arith.constant dense<0.000000e+00> : vector<64x128xf32>
    %62 = tpu.matmul %60, %61, %cst_30 {dimension_numbers = #tpu.dot_dimension_numbers<[1], [0], [0], [1], [0, 0, 1, 1], [], []>} : vector<64x32xbf16>, vector<32x128xbf16>, vector<64x128xf32> -> vector<64x128xf32>
    %63 = arith.addf %46, %62 : vector<64x128xf32>
    %c0_31 = arith.constant 0 : index
    %c0_32 = arith.constant 0 : index
    %c0_33 = arith.constant 0 : index
    %64 = vector.load %arg5[%c0_31, %c0_32, %c0_33] : memref<3x64x1xf32, #tpu.memory_space<vmem>>, vector<1x64x1xf32>
    %65 = vector.shape_cast %64 : vector<1x64x1xf32> to vector<64x1xf32>
    %66 = vector.broadcast %65 : vector<64x1xf32> to vector<64x128xf32>
    %67 = arith.addf %63, %66 : vector<64x128xf32>
    %68 = vector.extract_strided_slice %67 {offsets = [0, 0], sizes = [32, 128], strides = [1, 1]} : vector<64x128xf32> to vector<32x128xf32>
    %69 = math.tanh %68 : vector<32x128xf32>
    %70 = vector.extract_strided_slice %67 {offsets = [32, 0], sizes = [32, 128], strides = [1, 1]} : vector<64x128xf32> to vector<32x128xf32>
    %71 = arith.negf %70 : vector<32x128xf32>
    %72 = math.exp %71 : vector<32x128xf32>
    %cst_34 = arith.constant 1.000000e+00 : f32
    %73 = vector.broadcast %cst_34 : f32 to vector<32x128xf32>
    %74 = arith.addf %73, %72 : vector<32x128xf32>
    %75 = arith.divf %73, %74 : vector<32x128xf32>
    %76 = arith.mulf %69, %75 : vector<32x128xf32>
    %c0_35 = arith.constant 0 : index
    %c0_36 = arith.constant 0 : index
    %c0_37 = arith.constant 0 : index
    %77 = vector.load %arg6[%c0_35, %c0_36, %c0_37] : memref<3x64x32xbf16, #tpu.memory_space<vmem>>, vector<1x64x32xbf16>
    %78 = vector.shape_cast %77 : vector<1x64x32xbf16> to vector<64x32xbf16>
    %79 = arith.truncf %76 : vector<32x128xf32> to vector<32x128xbf16>
    %cst_38 = arith.constant dense<0.000000e+00> : vector<64x128xf32>
    %80 = tpu.matmul %78, %79, %cst_38 {dimension_numbers = #tpu.dot_dimension_numbers<[1], [0], [0], [1], [0, 0, 1, 1], [], []>} : vector<64x32xbf16>, vector<32x128xbf16>, vector<64x128xf32> -> vector<64x128xf32>
    %c0_39 = arith.constant 0 : index
    %c0_40 = arith.constant 0 : index
    %c0_41 = arith.constant 0 : index
    %81 = vector.load %arg7[%c0_39, %c0_40, %c0_41] : memref<3x64x1xf32, #tpu.memory_space<vmem>>, vector<1x64x1xf32>
    %82 = vector.shape_cast %81 : vector<1x64x1xf32> to vector<64x1xf32>
    %83 = vector.broadcast %82 : vector<64x1xf32> to vector<64x128xf32>
    %84 = arith.addf %80, %83 : vector<64x128xf32>
    %85 = vector.extract_strided_slice %84 {offsets = [0, 0], sizes = [32, 128], strides = [1, 1]} : vector<64x128xf32> to vector<32x128xf32>
    %86 = arith.addf %24, %85 : vector<32x128xf32>
    %87 = vector.extract_strided_slice %84 {offsets = [32, 0], sizes = [32, 128], strides = [1, 1]} : vector<64x128xf32> to vector<32x128xf32>
    %88 = arith.addf %25, %87 : vector<32x128xf32>
    %c2_i32 = arith.constant 2 : i32
    %89 = tpu.dynamic_rotate %86 by %c2_i32 dim 1 : vector<32x128xf32>, i32 -> vector<32x128xf32>
    %c-2_i32 = arith.constant -2 : i32
    %90 = vector.broadcast %c-2_i32 : i32 to vector<32x128xi32>
    %91 = arith.addi %18, %90 : vector<32x128xi32>
    %c0_i32_42 = arith.constant 0 : i32
    %92 = vector.broadcast %c0_i32_42 : i32 to vector<32x128xi32>
    %93 = arith.cmpi sge, %91, %92 : vector<32x128xi32>
    %c-2_i32_43 = arith.constant -2 : i32
    %94 = vector.broadcast %c-2_i32_43 : i32 to vector<32x128xi32>
    %95 = arith.addi %18, %94 : vector<32x128xi32>
    %c16_i32_44 = arith.constant 16 : i32
    %96 = vector.broadcast %c16_i32_44 : i32 to vector<32x128xi32>
    %97 = arith.cmpi slt, %95, %96 : vector<32x128xi32>
    %98 = arith.andi %93, %97 : vector<32x128xi1>
    %cst_45 = arith.constant 0.000000e+00 : f32
    %99 = vector.broadcast %cst_45 : f32 to vector<32x128xf32>
    %100 = arith.select %98, %89, %99 : vector<32x128xi1>, vector<32x128xf32>
    %c3 = arith.constant 3 : index
    %c0_46 = arith.constant 0 : index
    %c0_47 = arith.constant 0 : index
    %101 = vector.load %arg4[%c3, %c0_46, %c0_47] : memref<9x64x32xbf16, #tpu.memory_space<vmem>>, vector<1x64x32xbf16>
    %102 = vector.shape_cast %101 : vector<1x64x32xbf16> to vector<64x32xbf16>
    %103 = arith.truncf %100 : vector<32x128xf32> to vector<32x128xbf16>
    %cst_48 = arith.constant dense<0.000000e+00> : vector<64x128xf32>
    %104 = tpu.matmul %102, %103, %cst_48 {dimension_numbers = #tpu.dot_dimension_numbers<[1], [0], [0], [1], [0, 0, 1, 1], [], []>} : vector<64x32xbf16>, vector<32x128xbf16>, vector<64x128xf32> -> vector<64x128xf32>
    %c4 = arith.constant 4 : index
    %c0_49 = arith.constant 0 : index
    %c0_50 = arith.constant 0 : index
    %105 = vector.load %arg4[%c4, %c0_49, %c0_50] : memref<9x64x32xbf16, #tpu.memory_space<vmem>>, vector<1x64x32xbf16>
    %106 = vector.shape_cast %105 : vector<1x64x32xbf16> to vector<64x32xbf16>
    %107 = arith.truncf %86 : vector<32x128xf32> to vector<32x128xbf16>
    %cst_51 = arith.constant dense<0.000000e+00> : vector<64x128xf32>
    %108 = tpu.matmul %106, %107, %cst_51 {dimension_numbers = #tpu.dot_dimension_numbers<[1], [0], [0], [1], [0, 0, 1, 1], [], []>} : vector<64x32xbf16>, vector<32x128xbf16>, vector<64x128xf32> -> vector<64x128xf32>
    %109 = arith.addf %104, %108 : vector<64x128xf32>
    %c126_i32 = arith.constant 126 : i32
    %110 = tpu.dynamic_rotate %86 by %c126_i32 dim 1 : vector<32x128xf32>, i32 -> vector<32x128xf32>
    %c2_i32_52 = arith.constant 2 : i32
    %111 = vector.broadcast %c2_i32_52 : i32 to vector<32x128xi32>
    %112 = arith.addi %18, %111 : vector<32x128xi32>
    %c0_i32_53 = arith.constant 0 : i32
    %113 = vector.broadcast %c0_i32_53 : i32 to vector<32x128xi32>
    %114 = arith.cmpi sge, %112, %113 : vector<32x128xi32>
    %c2_i32_54 = arith.constant 2 : i32
    %115 = vector.broadcast %c2_i32_54 : i32 to vector<32x128xi32>
    %116 = arith.addi %18, %115 : vector<32x128xi32>
    %c16_i32_55 = arith.constant 16 : i32
    %117 = vector.broadcast %c16_i32_55 : i32 to vector<32x128xi32>
    %118 = arith.cmpi slt, %116, %117 : vector<32x128xi32>
    %119 = arith.andi %114, %118 : vector<32x128xi1>
    %cst_56 = arith.constant 0.000000e+00 : f32
    %120 = vector.broadcast %cst_56 : f32 to vector<32x128xf32>
    %121 = arith.select %119, %110, %120 : vector<32x128xi1>, vector<32x128xf32>
    %c5 = arith.constant 5 : index
    %c0_57 = arith.constant 0 : index
    %c0_58 = arith.constant 0 : index
    %122 = vector.load %arg4[%c5, %c0_57, %c0_58] : memref<9x64x32xbf16, #tpu.memory_space<vmem>>, vector<1x64x32xbf16>
    %123 = vector.shape_cast %122 : vector<1x64x32xbf16> to vector<64x32xbf16>
    %124 = arith.truncf %121 : vector<32x128xf32> to vector<32x128xbf16>
    %cst_59 = arith.constant dense<0.000000e+00> : vector<64x128xf32>
    %125 = tpu.matmul %123, %124, %cst_59 {dimension_numbers = #tpu.dot_dimension_numbers<[1], [0], [0], [1], [0, 0, 1, 1], [], []>} : vector<64x32xbf16>, vector<32x128xbf16>, vector<64x128xf32> -> vector<64x128xf32>
    %126 = arith.addf %109, %125 : vector<64x128xf32>
    %c1_60 = arith.constant 1 : index
    %c0_61 = arith.constant 0 : index
    %c0_62 = arith.constant 0 : index
    %127 = vector.load %arg5[%c1_60, %c0_61, %c0_62] : memref<3x64x1xf32, #tpu.memory_space<vmem>>, vector<1x64x1xf32>
    %128 = vector.shape_cast %127 : vector<1x64x1xf32> to vector<64x1xf32>
    %129 = vector.broadcast %128 : vector<64x1xf32> to vector<64x128xf32>
    %130 = arith.addf %126, %129 : vector<64x128xf32>
    %131 = vector.extract_strided_slice %130 {offsets = [0, 0], sizes = [32, 128], strides = [1, 1]} : vector<64x128xf32> to vector<32x128xf32>
    %132 = math.tanh %131 : vector<32x128xf32>
    %133 = vector.extract_strided_slice %130 {offsets = [32, 0], sizes = [32, 128], strides = [1, 1]} : vector<64x128xf32> to vector<32x128xf32>
    %134 = arith.negf %133 : vector<32x128xf32>
    %135 = math.exp %134 : vector<32x128xf32>
    %cst_63 = arith.constant 1.000000e+00 : f32
    %136 = vector.broadcast %cst_63 : f32 to vector<32x128xf32>
    %137 = arith.addf %136, %135 : vector<32x128xf32>
    %138 = arith.divf %136, %137 : vector<32x128xf32>
    %139 = arith.mulf %132, %138 : vector<32x128xf32>
    %c1_64 = arith.constant 1 : index
    %c0_65 = arith.constant 0 : index
    %c0_66 = arith.constant 0 : index
    %140 = vector.load %arg6[%c1_64, %c0_65, %c0_66] : memref<3x64x32xbf16, #tpu.memory_space<vmem>>, vector<1x64x32xbf16>
    %141 = vector.shape_cast %140 : vector<1x64x32xbf16> to vector<64x32xbf16>
    %142 = arith.truncf %139 : vector<32x128xf32> to vector<32x128xbf16>
    %cst_67 = arith.constant dense<0.000000e+00> : vector<64x128xf32>
    %143 = tpu.matmul %141, %142, %cst_67 {dimension_numbers = #tpu.dot_dimension_numbers<[1], [0], [0], [1], [0, 0, 1, 1], [], []>} : vector<64x32xbf16>, vector<32x128xbf16>, vector<64x128xf32> -> vector<64x128xf32>
    %c1_68 = arith.constant 1 : index
    %c0_69 = arith.constant 0 : index
    %c0_70 = arith.constant 0 : index
    %144 = vector.load %arg7[%c1_68, %c0_69, %c0_70] : memref<3x64x1xf32, #tpu.memory_space<vmem>>, vector<1x64x1xf32>
    %145 = vector.shape_cast %144 : vector<1x64x1xf32> to vector<64x1xf32>
    %146 = vector.broadcast %145 : vector<64x1xf32> to vector<64x128xf32>
    %147 = arith.addf %143, %146 : vector<64x128xf32>
    %148 = vector.extract_strided_slice %147 {offsets = [0, 0], sizes = [32, 128], strides = [1, 1]} : vector<64x128xf32> to vector<32x128xf32>
    %149 = arith.addf %86, %148 : vector<32x128xf32>
    %150 = vector.extract_strided_slice %147 {offsets = [32, 0], sizes = [32, 128], strides = [1, 1]} : vector<64x128xf32> to vector<32x128xf32>
    %151 = arith.addf %88, %150 : vector<32x128xf32>
    %c4_i32 = arith.constant 4 : i32
    %152 = tpu.dynamic_rotate %149 by %c4_i32 dim 1 : vector<32x128xf32>, i32 -> vector<32x128xf32>
    %c-4_i32 = arith.constant -4 : i32
    %153 = vector.broadcast %c-4_i32 : i32 to vector<32x128xi32>
    %154 = arith.addi %18, %153 : vector<32x128xi32>
    %c0_i32_71 = arith.constant 0 : i32
    %155 = vector.broadcast %c0_i32_71 : i32 to vector<32x128xi32>
    %156 = arith.cmpi sge, %154, %155 : vector<32x128xi32>
    %c-4_i32_72 = arith.constant -4 : i32
    %157 = vector.broadcast %c-4_i32_72 : i32 to vector<32x128xi32>
    %158 = arith.addi %18, %157 : vector<32x128xi32>
    %c16_i32_73 = arith.constant 16 : i32
    %159 = vector.broadcast %c16_i32_73 : i32 to vector<32x128xi32>
    %160 = arith.cmpi slt, %158, %159 : vector<32x128xi32>
    %161 = arith.andi %156, %160 : vector<32x128xi1>
    %cst_74 = arith.constant 0.000000e+00 : f32
    %162 = vector.broadcast %cst_74 : f32 to vector<32x128xf32>
    %163 = arith.select %161, %152, %162 : vector<32x128xi1>, vector<32x128xf32>
    %c6 = arith.constant 6 : index
    %c0_75 = arith.constant 0 : index
    %c0_76 = arith.constant 0 : index
    %164 = vector.load %arg4[%c6, %c0_75, %c0_76] : memref<9x64x32xbf16, #tpu.memory_space<vmem>>, vector<1x64x32xbf16>
    %165 = vector.shape_cast %164 : vector<1x64x32xbf16> to vector<64x32xbf16>
    %166 = arith.truncf %163 : vector<32x128xf32> to vector<32x128xbf16>
    %cst_77 = arith.constant dense<0.000000e+00> : vector<64x128xf32>
    %167 = tpu.matmul %165, %166, %cst_77 {dimension_numbers = #tpu.dot_dimension_numbers<[1], [0], [0], [1], [0, 0, 1, 1], [], []>} : vector<64x32xbf16>, vector<32x128xbf16>, vector<64x128xf32> -> vector<64x128xf32>
    %c7 = arith.constant 7 : index
    %c0_78 = arith.constant 0 : index
    %c0_79 = arith.constant 0 : index
    %168 = vector.load %arg4[%c7, %c0_78, %c0_79] : memref<9x64x32xbf16, #tpu.memory_space<vmem>>, vector<1x64x32xbf16>
    %169 = vector.shape_cast %168 : vector<1x64x32xbf16> to vector<64x32xbf16>
    %170 = arith.truncf %149 : vector<32x128xf32> to vector<32x128xbf16>
    %cst_80 = arith.constant dense<0.000000e+00> : vector<64x128xf32>
    %171 = tpu.matmul %169, %170, %cst_80 {dimension_numbers = #tpu.dot_dimension_numbers<[1], [0], [0], [1], [0, 0, 1, 1], [], []>} : vector<64x32xbf16>, vector<32x128xbf16>, vector<64x128xf32> -> vector<64x128xf32>
    %172 = arith.addf %167, %171 : vector<64x128xf32>
    %c124_i32 = arith.constant 124 : i32
    %173 = tpu.dynamic_rotate %149 by %c124_i32 dim 1 : vector<32x128xf32>, i32 -> vector<32x128xf32>
    %c4_i32_81 = arith.constant 4 : i32
    %174 = vector.broadcast %c4_i32_81 : i32 to vector<32x128xi32>
    %175 = arith.addi %18, %174 : vector<32x128xi32>
    %c0_i32_82 = arith.constant 0 : i32
    %176 = vector.broadcast %c0_i32_82 : i32 to vector<32x128xi32>
    %177 = arith.cmpi sge, %175, %176 : vector<32x128xi32>
    %c4_i32_83 = arith.constant 4 : i32
    %178 = vector.broadcast %c4_i32_83 : i32 to vector<32x128xi32>
    %179 = arith.addi %18, %178 : vector<32x128xi32>
    %c16_i32_84 = arith.constant 16 : i32
    %180 = vector.broadcast %c16_i32_84 : i32 to vector<32x128xi32>
    %181 = arith.cmpi slt, %179, %180 : vector<32x128xi32>
    %182 = arith.andi %177, %181 : vector<32x128xi1>
    %cst_85 = arith.constant 0.000000e+00 : f32
    %183 = vector.broadcast %cst_85 : f32 to vector<32x128xf32>
    %184 = arith.select %182, %173, %183 : vector<32x128xi1>, vector<32x128xf32>
    %c8 = arith.constant 8 : index
    %c0_86 = arith.constant 0 : index
    %c0_87 = arith.constant 0 : index
    %185 = vector.load %arg4[%c8, %c0_86, %c0_87] : memref<9x64x32xbf16, #tpu.memory_space<vmem>>, vector<1x64x32xbf16>
    %186 = vector.shape_cast %185 : vector<1x64x32xbf16> to vector<64x32xbf16>
    %187 = arith.truncf %184 : vector<32x128xf32> to vector<32x128xbf16>
    %cst_88 = arith.constant dense<0.000000e+00> : vector<64x128xf32>
    %188 = tpu.matmul %186, %187, %cst_88 {dimension_numbers = #tpu.dot_dimension_numbers<[1], [0], [0], [1], [0, 0, 1, 1], [], []>} : vector<64x32xbf16>, vector<32x128xbf16>, vector<64x128xf32> -> vector<64x128xf32>
    %189 = arith.addf %172, %188 : vector<64x128xf32>
    %c2_89 = arith.constant 2 : index
    %c0_90 = arith.constant 0 : index
    %c0_91 = arith.constant 0 : index
    %190 = vector.load %arg5[%c2_89, %c0_90, %c0_91] : memref<3x64x1xf32, #tpu.memory_space<vmem>>, vector<1x64x1xf32>
    %191 = vector.shape_cast %190 : vector<1x64x1xf32> to vector<64x1xf32>
    %192 = vector.broadcast %191 : vector<64x1xf32> to vector<64x128xf32>
    %193 = arith.addf %189, %192 : vector<64x128xf32>
    %194 = vector.extract_strided_slice %193 {offsets = [0, 0], sizes = [32, 128], strides = [1, 1]} : vector<64x128xf32> to vector<32x128xf32>
    %195 = math.tanh %194 : vector<32x128xf32>
    %196 = vector.extract_strided_slice %193 {offsets = [32, 0], sizes = [32, 128], strides = [1, 1]} : vector<64x128xf32> to vector<32x128xf32>
    %197 = arith.negf %196 : vector<32x128xf32>
    %198 = math.exp %197 : vector<32x128xf32>
    %cst_92 = arith.constant 1.000000e+00 : f32
    %199 = vector.broadcast %cst_92 : f32 to vector<32x128xf32>
    %200 = arith.addf %199, %198 : vector<32x128xf32>
    %201 = arith.divf %199, %200 : vector<32x128xf32>
    %202 = arith.mulf %195, %201 : vector<32x128xf32>
    %c2_93 = arith.constant 2 : index
    %c0_94 = arith.constant 0 : index
    %c0_95 = arith.constant 0 : index
    %203 = vector.load %arg6[%c2_93, %c0_94, %c0_95] : memref<3x64x32xbf16, #tpu.memory_space<vmem>>, vector<1x64x32xbf16>
    %204 = vector.shape_cast %203 : vector<1x64x32xbf16> to vector<64x32xbf16>
    %205 = arith.truncf %202 : vector<32x128xf32> to vector<32x128xbf16>
    %cst_96 = arith.constant dense<0.000000e+00> : vector<64x128xf32>
    %206 = tpu.matmul %204, %205, %cst_96 {dimension_numbers = #tpu.dot_dimension_numbers<[1], [0], [0], [1], [0, 0, 1, 1], [], []>} : vector<64x32xbf16>, vector<32x128xbf16>, vector<64x128xf32> -> vector<64x128xf32>
    %c2_97 = arith.constant 2 : index
    %c0_98 = arith.constant 0 : index
    %c0_99 = arith.constant 0 : index
    %207 = vector.load %arg7[%c2_97, %c0_98, %c0_99] : memref<3x64x1xf32, #tpu.memory_space<vmem>>, vector<1x64x1xf32>
    %208 = vector.shape_cast %207 : vector<1x64x1xf32> to vector<64x1xf32>
    %209 = vector.broadcast %208 : vector<64x1xf32> to vector<64x128xf32>
    %210 = arith.addf %206, %209 : vector<64x128xf32>
    %211 = vector.extract_strided_slice %210 {offsets = [0, 0], sizes = [32, 128], strides = [1, 1]} : vector<64x128xf32> to vector<32x128xf32>
    %212 = arith.addf %151, %211 : vector<32x128xf32>
    %c0_100 = arith.constant 0 : index
    %c0_101 = arith.constant 0 : index
    %213 = vector.load %arg8[%c0_100, %c0_101] : memref<4x32xbf16, #tpu.memory_space<vmem>>, vector<4x32xbf16>
    %214 = arith.truncf %212 : vector<32x128xf32> to vector<32x128xbf16>
    %cst_102 = arith.constant dense<0.000000e+00> : vector<4x128xf32>
    %215 = tpu.matmul %213, %214, %cst_102 {dimension_numbers = #tpu.dot_dimension_numbers<[1], [0], [0], [1], [0, 0, 1, 1], [], []>} : vector<4x32xbf16>, vector<32x128xbf16>, vector<4x128xf32> -> vector<4x128xf32>
    %c0_103 = arith.constant 0 : index
    %c0_104 = arith.constant 0 : index
    %216 = vector.load %arg9[%c0_103, %c0_104] : memref<4x1xf32, #tpu.memory_space<vmem>>, vector<4x1xf32>
    %217 = vector.broadcast %216 : vector<4x1xf32> to vector<4x128xf32>
    %218 = arith.addf %215, %217 : vector<4x128xf32>
    %219 = vector.extract_strided_slice %218 {offsets = [0, 0], sizes = [2, 128], strides = [1, 1]} : vector<4x128xf32> to vector<2x128xf32>
    %220 = vector.extract_strided_slice %218 {offsets = [2, 0], sizes = [2, 128], strides = [1, 1]} : vector<4x128xf32> to vector<2x128xf32>
    %c0_105 = arith.constant 0 : index
    %c0_106 = arith.constant 0 : index
    %221 = vector.load %arg10[%c0_105, %c0_106] : memref<4x128xf32, #tpu.memory_space<vmem>>, vector<2x128xf32>
    tpu.vector_store %arg10[%c0_105, %c0_106], %0 {strides = array<i32>} : memref<4x128xf32, #tpu.memory_space<vmem>>, vector<2x128xf32>,
    %222 = math.exp %220 : vector<2x128xf32>
    %223 = arith.mulf %1, %222 : vector<2x128xf32>
    %224 = arith.addf %219, %223 : vector<2x128xf32>
    %c2_107 = arith.constant 2 : index
    %c0_108 = arith.constant 0 : index
    %225 = vector.load %arg10[%c2_107, %c0_108] : memref<4x128xf32, #tpu.memory_space<vmem>>, vector<2x128xf32>
    tpu.vector_store %arg10[%c2_107, %c0_108], %224 {strides = array<i32>} : memref<4x128xf32, #tpu.memory_space<vmem>>, vector<2x128xf32>,
    %226 = vector.extract_strided_slice %220 {offsets = [0, 0], sizes = [2, 16], strides = [1, 1]} : vector<2x128xf32> to vector<2x16xf32>
    %227 = vector.shape_cast %226 : vector<2x16xf32> to vector<1x2x16xf32>
    %cst_109 = arith.constant dense<0.000000e+00> : vector<1xf32>
    %228 = vector.multi_reduction <add>, %227, %cst_109 [1, 2] : vector<1x2x16xf32> to vector<1xf32>
    %229 = vector.shape_cast %228 : vector<1xf32> to vector<1x1x1xf32>
    %230 = vector.extract %229[0, 0, 0] : f32 from vector<1x1x1xf32>
    %c0_110 = arith.constant 0 : index
    %231 = memref.load %arg11[%c0_110] : memref<2xf32, #tpu.memory_space<smem>>
    memref.store %230, %arg11[%c0_110] : memref<2xf32, #tpu.memory_space<smem>>
    %232 = vector.extract_strided_slice %220 {offsets = [0, 16], sizes = [2, 16], strides = [1, 1]} : vector<2x128xf32> to vector<2x16xf32>
    %233 = vector.shape_cast %232 : vector<2x16xf32> to vector<1x2x16xf32>
    %cst_111 = arith.constant dense<0.000000e+00> : vector<1xf32>
    %234 = vector.multi_reduction <add>, %233, %cst_111 [1, 2] : vector<1x2x16xf32> to vector<1xf32>
    %235 = vector.shape_cast %234 : vector<1xf32> to vector<1x1x1xf32>
    %236 = vector.extract %235[0, 0, 0] : f32 from vector<1x1x1xf32>
    %c1_112 = arith.constant 1 : index
    %237 = memref.load %arg11[%c1_112] : memref<2xf32, #tpu.memory_space<smem>>
    memref.store %236, %arg11[%c1_112] : memref<2xf32, #tpu.memory_space<smem>>
    return
  }
  func.func @transform_0(%arg0: i32) -> (i32, i32) {
    %c0_i32 = arith.constant 0 : i32
    %c0_i32_0 = arith.constant 0 : i32
    %c0_i32_1 = arith.constant 0 : i32
    return %c0_i32, %c0_i32_0 : i32, i32
  }
  func.func @transform_1(%arg0: i32) -> (i32, i32) {
    %c0_i32 = arith.constant 0 : i32
    %c0_i32_0 = arith.constant 0 : i32
    %c0_i32_1 = arith.constant 0 : i32
    return %c0_i32, %c0_i32_0 : i32, i32
  }
  func.func @transform_2(%arg0: i32) -> (i32, i32) {
    %c0_i32 = arith.constant 0 : i32
    %c0_i32_0 = arith.constant 0 : i32
    %c0_i32_1 = arith.constant 0 : i32
    return %c0_i32, %c0_i32_0 : i32, i32
  }
  func.func @transform_3(%arg0: i32) -> (i32, i32, i32) {
    %c0_i32 = arith.constant 0 : i32
    %c0_i32_0 = arith.constant 0 : i32
    %c0_i32_1 = arith.constant 0 : i32
    %c0_i32_2 = arith.constant 0 : i32
    return %c0_i32, %c0_i32_0, %c0_i32_1 : i32, i32, i32
  }
  func.func @transform_4(%arg0: i32) -> (i32, i32, i32) {
    %c0_i32 = arith.constant 0 : i32
    %c0_i32_0 = arith.constant 0 : i32
    %c0_i32_1 = arith.constant 0 : i32
    %c0_i32_2 = arith.constant 0 : i32
    return %c0_i32, %c0_i32_0, %c0_i32_1 : i32, i32, i32
  }
  func.func @transform_5(%arg0: i32) -> (i32, i32, i32) {
    %c0_i32 = arith.constant 0 : i32
    %c0_i32_0 = arith.constant 0 : i32
    %c0_i32_1 = arith.constant 0 : i32
    %c0_i32_2 = arith.constant 0 : i32
    return %c0_i32, %c0_i32_0, %c0_i32_1 : i32, i32, i32
  }
  func.func @transform_6(%arg0: i32) -> (i32, i32, i32) {
    %c0_i32 = arith.constant 0 : i32
    %c0_i32_0 = arith.constant 0 : i32
    %c0_i32_1 = arith.constant 0 : i32
    %c0_i32_2 = arith.constant 0 : i32
    return %c0_i32, %c0_i32_0, %c0_i32_1 : i32, i32, i32
  }
  func.func @transform_7(%arg0: i32) -> (i32, i32) {
    %c0_i32 = arith.constant 0 : i32
    %c0_i32_0 = arith.constant 0 : i32
    %c0_i32_1 = arith.constant 0 : i32
    return %c0_i32, %c0_i32_0 : i32, i32
  }
  func.func @transform_8(%arg0: i32) -> (i32, i32) {
    %c0_i32 = arith.constant 0 : i32
    %c0_i32_0 = arith.constant 0 : i32
    %c0_i32_1 = arith.constant 0 : i32
    return %c0_i32, %c0_i32_0 : i32, i32
  }
  func.func @transform_9(%arg0: i32) -> (i32, i32) {
    %c0_i32 = arith.constant 0 : i32
    %c0_i32_0 = arith.constant 0 : i32
    %c0_i32_1 = arith.constant 0 : i32
    return %c0_i32, %c0_i32_0 : i32, i32
  }
  func.func @transform_10(%arg0: i32) -> i32 {
    %c0_i32 = arith.constant 0 : i32
    %c0_i32_0 = arith.constant 0 : i32
    return %c0_i32 : i32
  }
}

</mosaic_0001>

<bundles_post_ra>
// kernel: residual_coupling_forward.1
= control target key start
LH: loop header
LB: loop body
LE: loop exit
PB: predicated region body
PF: predicated region fallthrough
CT: control target
= control target key end

     0   :  { %vm98_vm0 = vcmask 1040384   ;;  %vm91_vm1 = vcmask 15360   ;;  %v2878_v6 = vmov 0   ;;  %s3403_s0 = inlined_call_operand.vmem [shape: f32[4,128], index: 0, kind: input, shape index: {}]   ;;  %s3404_s1 = inlined_call_operand.vmem [shape: bf16[32,2], index: 1, kind: input, shape index: {}]   ;;  %s3405_s2 = inlined_call_operand.vmem [shape: f32[32,1], index: 2, kind: input, shape index: {}]   ;;  %s3406_s3 = inlined_call_operand.vmem [shape: bf16[9,64,32], index: 3, kind: input, shape index: {}]   ;;  %s3407_s4 = inlined_call_operand.vmem [shape: f32[3,64,1], index: 4, kind: input, shape index: {}]   ;;  %s3408_s5 = inlined_call_operand.vmem [shape: bf16[3,64,32], index: 5, kind: input, shape index: {}]   ;;  %s3409_s6 = inlined_call_operand.vmem [shape: f32[3,64,1], index: 6, kind: input, shape index: {}]   ;;  %s3410_s7 = inlined_call_operand.vmem [shape: bf16[4,32], index: 7, kind: input, shape index: {}]   ;;  %s3411_s8 = inlined_call_operand.vmem [shape: f32[4,1], index: 8, kind: input, shape index: {}]   ;;  %s3412_s9 = inlined_call_operand.vmem [shape: f32[4,128], index: 9, kind: output, shape index: {0}]   ;;  %s3413_s10 = inlined_call_operand.hbm [shape: f32[2], index: 10, kind: output, shape index: {1}]  }
   0x1   :  { %v36_v0 = vld [vmem:[%s3403_s0] sm:$0x3]  ;;  %v2743_v3 = vld [vmem:[%s3404_s1 + $0x8] sm:$0xff]   ;;  %2680 = vset.pattern.permute.xlu0 %v2878_v6  ;;  %v59_v7 = vld [vmem:[%s3405_s2 + $0x10] sm:$0xff]  ;;  %2681 = vset.pattern.permute.xlu1 %v2878_v6 }
   0x2   :  { %v2742_v1 = vld [vmem:[%s3404_s1] sm:$0xff]   ;;  %v56_v2 = vpack.c.bf16 %v36_v0, %v36_v0  ;;  %2042 = vst [vmem:[%s3412_s9] sm:$0x3] %v36_v0  ;;  %v58_v8 = vld [vmem:[%s3405_s2 + $0x8] sm:$0xff]  ;;  %v60_v9 = vld [vmem:[%s3405_s2 + $0x18] sm:$0xff]  ;;  %73 = vperm.xlu1 %2681, %v59_v7  }
   0x3   :  { %2440 = vmatprep.mubr.msk.bf16.mxu0 %vm91_vm1, %v2742_v1  ;;  %v57_v4 = vld [vmem:[%s3405_s2] sm:$0xff] }
   0x4   :  { %2664 = vmatprep.subr.msk.bf16.mxu0 %vm98_vm0, %v56_v2  ;;  %v100_v5 = vsel %vm98_vm0, %v56_v2, 0  ;;  %63 = vperm.xlu0 %2680, %v57_v4  }
   0x5   :  { %2439 = vmatpush3.bf16.msra.mxu0 %v100_v5 }
   0x6   :  { %78 = vperm.xlu1 %2681, %v60_v9  }
   0x8   :  { %2441 = vmatmul.mubr.msk.bf16.vlgmr.msra.gmra.mrb[0].mxu0 %vm91_vm1, %v2743_v3  ;;  %68 = vperm.xlu0 %2680, %v58_v8  }
   0x9   :  { %16 = vsyncpa [#allocation3], 0  ;;  %v2744_v10 = vld [vmem:[%s3406_s3 + $0x20] sm:$0xff]   ;;  %vm208_vm2 = vcmask 261120   ;;  %s2879_s2 = smov 1   ;;  %s2880_s30 = smov 127   ;;  %v38_v43 = vlaneseq }
   0xa   :  { %2448 = vmatprep.mubr.msk.bf16.mxu1 %vm208_vm2, %v2744_v10  ;;  %v520_v27 = vld [vmem:[%s3407_s4 + $0x28] sm:$0xff]  ;;  %v519_v29 = vld [vmem:[%s3407_s4 + $0x20] sm:$0xff]  ;;  %v2746_v30 = vld [vmem:[%s3406_s3 + $0x30] sm:$0xff]   ;;  %s2881_s23 = smov 2   ;;  %s2882_s24 = smov 126   ;;  %vm2886_vm15 = vmmov 0  }
   0xb   :  { %v2745_v28 = vld [vmem:[%s3406_s3 + $0x28] sm:$0xff]   ;;  %v522_v31 = vld [vmem:[%s3407_s4 + $0x38] sm:$0xff]  ;;  %v521_v32 = vld [vmem:[%s3407_s4 + $0x30] sm:$0xff]  ;;  %v39_v44 = vand.u32 127, %v38_v43  ;;  %s2883_s11 = smov 4   ;;  %s2884_s12 = smov 124  }
   0xc   :  { %v516_v33 = vld [vmem:[%s3407_s4 + $0x8] sm:$0xff]  ;;  %v2747_v34 = vld [vmem:[%s3406_s3 + $0x38] sm:$0xff]   ;;  %v515_v35 = vld [vmem:[%s3407_s4] sm:$0xff]  ;;  %vm2054_vm0 = vcmask 123904   ;;  %s2866_s22 = scalar_lea.hbm %s3413_s10, 16 }
   0xd   :  { %v2748_v36 = vld [vmem:[%s3406_s3] sm:$0xff]   ;;  %v518_v37 = vld [vmem:[%s3407_s4 + $0x18] sm:$0xff]  ;;  %v517_v38 = vld [vmem:[%s3407_s4 + $0x10] sm:$0xff]  ;;  %v3040_v45 = vand.u32 15, %v39_v44  ;;  %p2867_p0 = scmp.ne.s32.totalorder %s3413_s10, %s2866_s22  ;;  %p2870_p1 = scmp.lt.u32.totalorder %s2866_s22, %s3413_s10 }
   0xe   :  { %v614_v39 = vld [vmem:[%s3409_s6 + $0x8] sm:$0xff]  ;;  %v613_v40 = vld [vmem:[%s3409_s6] sm:$0xff]  ;;  %v616_v41 = vld [vmem:[%s3409_s6 + $0x18] sm:$0xff] }
   0xf   :  { %v615_v42 = vld [vmem:[%s3409_s6 + $0x10] sm:$0xff]  ;;  %v159_v46 = vadd.s32 4294967295, %v3040_v45  ;;  %v391_v49 = vadd.s32 1, %v3040_v45  ;;  %v2749_v0 = vld [vmem:[%s3406_s3 + $0x8] sm:$0xff]   ;;  %v2751_v3 = vld [vmem:[%s3406_s3 + $0x18] sm:$0xff]   ;;  %p2872_p2 = pnand %p2870_p1, %p2867_p0 }
  0x10   :  { %v2750_v1 = vld [vmem:[%s3406_s3 + $0x10] sm:$0xff]   ;;  %v2752_v4 = vld [vmem:[%s3406_s3 + $0x40] sm:$0xff]   ;;  %v2753_v5 = vld [vmem:[%s3406_s3 + $0x48] sm:$0xff]  }
  0x11   :  { %vm160_vm3 = vcmp.ge.s32.totalorder %v159_v46, 0  ;;  %vm393_vm5 = vcmp.lt.s32.totalorder %v391_v49, 16  ;;  %v2754_v6 = vld [vmem:[%s3406_s3 + $0x50] sm:$0xff]   ;;  %v2755_v7 = vld [vmem:[%s3406_s3 + $0x58] sm:$0xff]   ;;  %v2756_v8 = vld [vmem:[%s3408_s5] sm:$0xff]  }
  0x12   :  { %vm3044_vm4 = vmpackc.low %vm160_vm3, %vm160_vm3  ;;  %2484 = vmatprep.mubr.msk.bf16.mxu0 %vm208_vm2, %v2756_v8 }
  0x13   :  { %vm2145_vm6 = vmpackc.low %vm393_vm5, %vm393_vm5 }
  0x81   :  { %v74_v11 = vpop.permute.xlu1 %73 }
  0x83   :  { %v64_v12 = vpop.permute.xlu0 %63 }
  0x85   :  { %v79_v14 = vpop.permute.xlu1 %78 }
  0x87   :  { %v69_v17 = vpop.permute.xlu0 %68 }
  0xdb   :  { %v2442_v13 = vpop.f32.mrb[0].mxu0 }
  0xdc   :  { %v136_v15 = vpop.f32.mrb[1].mxu0  ;;  %v2972_v18 = vadd.f32 %v2442_v13, %v74_v11 }
  0xdd   :  { %v2443_v16 = vpop.f32.mrb[2].mxu0  ;;  %v2976_v21 = vadd.f32 %v136_v15, %v64_v12 }
  0xde   :  { %v2974_v19 = vadd.f32 %v2443_v16, %v79_v14  ;;  %v139_v20 = vpop.f32.mrb[3].mxu0 }
  0xdf   :  { %v2978_v22 = vadd.f32 %v139_v20, %v69_v17 }
  0xe0   :  { %v2687_v23 = vpack.i.bf16 %v2974_v19, %v2972_v18  ;;  %v187_v26 = vpack.c.bf16 %v2974_v19, %v2972_v18 }
  0xe1   :  { %v2682_v24 = vpack.i.bf16 %v2978_v22, %v2976_v21  ;;  %v186_v25 = vpack.c.bf16 %v2978_v22, %v2976_v21 }
  0xe2   :  { %2688 = vrot.lane.b32.xlu1 %v2687_v23, %s2879_s2 }
  0xe3   :  { %2683 = vrot.lane.b32.xlu0 %v2682_v24, %s2879_s2  ;;  %2444 = vmatprep.subr.bf16.mxu1 %v186_v25 }
  0xe4   :  { %2445 = vmatpush3.bf16.msra.mxu1 %v186_v25 }
  0xe5   :  { %2446 = vmatprep.subr.bf16.mxu1 %v187_v26 }
  0xe6   :  { %2698 = vrot.lane.b32.xlu1 %v2687_v23, %s2880_s30 }
  0xe7   :  { %2693 = vrot.lane.b32.xlu0 %v2682_v24, %s2880_s30 }
  0xe8   :  { %2447 = vmatpush3.bf16.msra.mxu1 %v187_v26 }
  0xea   :  { %550 = vperm.xlu1 %2681, %v520_v27  }
  0xeb   :  { %545 = vperm.xlu0 %2680, %v519_v29   ;;  %2449 = vmatmul.mubr.msk.bf16.vlgmr.msra.gmra.mrb[0].mxu1 %vm208_vm2, %v2745_v28 }
  0xec   :  { %2452 = vmatprep.mubr.msk.bf16.mxu1 %vm208_vm2, %v2746_v30 }
  0xee   :  { %560 = vperm.xlu1 %2681, %v522_v31  }
  0xef   :  { %555 = vperm.xlu0 %2680, %v521_v32  }
  0xf2   :  { %530 = vperm.xlu1 %2681, %v516_v33  }
  0xf3   :  { %525 = vperm.xlu0 %2680, %v515_v35   ;;  %2453 = vmatmul.mubr.msk.bf16.gmra.mrb[4].mxu1 %vm208_vm2, %v2747_v34 }
  0xf4   :  { %2460 = vmatprep.mubr.msk.bf16.mxu1 %vm208_vm2, %v2748_v36 }
  0xf6   :  { %540 = vperm.xlu1 %2681, %v518_v37  }
  0xf7   :  { %535 = vperm.xlu0 %2680, %v517_v38  }
  0xfa   :  { %628 = vperm.xlu1 %2681, %v614_v39  }
  0xfb   :  { %623 = vperm.xlu0 %2680, %v613_v40  }
  0xfe   :  { %638 = vperm.xlu1 %2681, %v616_v41  }
  0xff   :  { %633 = vperm.xlu0 %2680, %v615_v42  }
 0x154   :  { %v2689_v47 = vpop.permute.xlu1 %2688 }
 0x155   :  { %v2684_v48 = vpop.permute.xlu0 %2683  ;;  %v2691_v50 = vunpack.i.h.bf16 %v2689_v47  ;;  %v2690_v51 = vunpack.i.l.bf16 %v2689_v47 }
 0x156   :  { %v2686_v52 = vunpack.i.h.bf16 %v2684_v48  ;;  %v2685_v53 = vunpack.i.l.bf16 %v2684_v48 }
 0x157   :  { %v2127_v57 = vpack.c.bf16 %v2691_v50, %v2690_v51 }
 0x158   :  { %v2124_v55 = vpack.c.bf16 %v2686_v52, %v2685_v53  ;;  %v2699_v60 = vpop.permute.xlu1 %2698 }
 0x159   :  { %v2694_v56 = vpop.permute.xlu0 %2693  ;;  %v2701_v61 = vunpack.i.h.bf16 %v2699_v60  ;;  %v2700_v62 = vunpack.i.l.bf16 %v2699_v60 }
 0x15a   :  { %v2696_v58 = vunpack.i.h.bf16 %v2694_v56  ;;  %v2695_v59 = vunpack.i.l.bf16 %v2694_v56  ;;  %2456 = vmatprep.subr.msk.bf16.mxu1 %vm3044_vm4, %v2124_v55 }
 0x15b   :  { %2457 = vmatpush3.bf16.msk.msra.mxu1 %vm3044_vm4, %v2124_v55  ;;  %v2149_v2 = vpack.c.bf16 %v2701_v61, %v2700_v62 }
 0x15c   :  { %2458 = vmatprep.subr.msk.bf16.mxu1 %vm3044_vm4, %v2127_v57  ;;  %v2146_v63 = vpack.c.bf16 %v2696_v58, %v2695_v59 }
 0x15f   :  { %2459 = vmatpush3.bf16.msk.msra.mxu1 %vm3044_vm4, %v2127_v57 }
 0x160   :  { %2468 = vmatprep.subr.msk.bf16.mxu1 %vm2145_vm6, %v2146_v63 }
 0x162   :  { %2461 = vmatmul.mubr.msk.bf16.vlgmr.msra.gmra.mrb[0].mxu1 %vm208_vm2, %v2749_v0  ;;  %v2757_v0 = vld [vmem:[%s3408_s5 + $0x8] sm:$0xff]  }
 0x163   :  { %2469 = vmatpush3.bf16.msk.msra.mxu1 %vm2145_vm6, %v2146_v63  ;;  %2464 = vmatprep.mubr.msk.bf16.mxu1 %vm208_vm2, %v2750_v1  ;;  %v2758_v1 = vld [vmem:[%s3408_s5 + $0x10] sm:$0xff]  }
 0x164   :  { %2470 = vmatprep.subr.msk.bf16.mxu1 %vm2145_vm6, %v2149_v2 }
 0x167   :  { %2471 = vmatpush3.bf16.msk.msra.mxu1 %vm2145_vm6, %v2149_v2  ;;  %v2759_v2 = vld [vmem:[%s3408_s5 + $0x18] sm:$0xff]  }
 0x169   :  { %v551_v11 = vpop.permute.xlu1 %550 }
 0x16a   :  { %2465 = vmatmul.mubr.msk.bf16.gmra.mrb[4].mxu1 %vm208_vm2, %v2751_v3  ;;  %v546_v9 = vpop.permute.xlu0 %545  ;;  %v2760_v3 = vld [vmem:[%s3406_s3 + $0x80] sm:$0xff]  }
 0x16b   :  { %2472 = vmatprep.mubr.msk.bf16.mxu1 %vm208_vm2, %v2752_v4 }
 0x16d   :  { %v561_v16 = vpop.permute.xlu1 %560 }
 0x16e   :  { %v556_v15 = vpop.permute.xlu0 %555 }
 0x171   :  { %v531_v32 = vpop.permute.xlu1 %530 }
 0x172   :  { %2473 = vmatmul.mubr.msk.bf16.vlgmr.msra.gmra.mrb[0].mxu1 %vm208_vm2, %v2753_v5  ;;  %v526_v26 = vpop.permute.xlu0 %525 }
 0x173   :  { %2476 = vmatprep.mubr.msk.bf16.mxu1 %vm208_vm2, %v2754_v6 }
 0x175   :  { %v541_v37 = vpop.permute.xlu1 %540 }
 0x176   :  { %v536_v35 = vpop.permute.xlu0 %535 }
 0x179   :  { %v629_v5 = vpop.permute.xlu1 %628 }
 0x17a   :  { %2477 = vmatmul.mubr.msk.bf16.gmra.mrb[4].mxu1 %vm208_vm2, %v2755_v7  ;;  %v624_v4 = vpop.permute.xlu0 %623 }
 0x17e   :  { %v634_v6 = vpop.permute.xlu0 %633 }
 0x245   :  { %v2474_v10 = vpop.f32.mrb[0].mxu1 }
 0x246   :  { %v476_v12 = vpop.f32.mrb[1].mxu1  ;;  %v565_v36 = vadd.f32 %v2474_v10, %v536_v35  ;;  %v639_v10 = vpop.permute.xlu1 %638  ;;  %v2229_v35 = vld [vmem:[%s3407_s4 + $0x50] sm:$0xff] }
 0x247   :  { %v2475_v13 = vpop.f32.mrb[2].mxu1  ;;  %v563_v38 = vadd.f32 %v526_v26, %v476_v12 }
 0x248   :  { %v479_v14 = vpop.f32.mrb[3].mxu1  ;;  %v566_v39 = vadd.f32 %v2475_v13, %v541_v37  ;;  %v2247_v37 = vld [vmem:[%s3409_s6 + $0x40] sm:$0xff] }
 0x249   :  { %v564_v40 = vadd.f32 %v531_v32, %v479_v14  ;;  %v2227_v32 = vld [vmem:[%s3407_s4 + $0x40] sm:$0xff] }
 0x24d   :  { %v2478_v17 = vpop.f32.mrb[4].mxu1 }
 0x24e   :  { %v569_v20 = vadd.f32 %v2478_v17, %v556_v15  ;;  %v492_v23 = vpop.f32.mrb[5].mxu1 }
 0x24f   :  { %v567_v24 = vadd.f32 %v546_v9, %v492_v23  ;;  %v2479_v25 = vpop.f32.mrb[6].mxu1 }
 0x250   :  { %v2157_v27 = vmul.f32 -1.442695, %v569_v20  ;;  %v570_v28 = vadd.f32 %v2479_v25, %v561_v16  ;;  %v495_v29 = vpop.f32.mrb[7].mxu1 }
 0x251   :  { %v2155_v30 = vmul.f32 -1.442695, %v567_v24  ;;  %v568_v31 = vadd.f32 %v551_v11, %v495_v29  ;;  %v2233_v29 = vld [vmem:[%s3407_s4 + $0x70] sm:$0xff] }
 0x252   :  { %2792 = vpow2.f32 %v2157_v27  ;;  %v2158_v33 = vmul.f32 -1.442695, %v570_v28  ;;  %v2762_v27 = vld [vmem:[%s3406_s3 + $0x90] sm:$0xff]   ;;  %v2234_v28 = vld [vmem:[%s3407_s4 + $0x78] sm:$0xff] }
 0x253   :  { %2794 = vpow2.f32 %v2155_v30  ;;  %v2156_v34 = vmul.f32 -1.442695, %v568_v31  ;;  %v2228_v30 = vld [vmem:[%s3407_s4 + $0x48] sm:$0xff]  ;;  %v2763_v31 = vld [vmem:[%s3406_s3 + $0x98] sm:$0xff]  }
 0x254   :  { %2796 = vpow2.f32 %v2158_v33  ;;  %v2764_v33 = vld [vmem:[%s3406_s3 + $0x60] sm:$0xff]  }
 0x255   :  { %2798 = vpow2.f32 %v2156_v34  ;;  %v2230_v34 = vld [vmem:[%s3407_s4 + $0x58] sm:$0xff] }
 0x256   :  { %2800 = vtanh.f32 %v565_v36  ;;  %v2248_v36 = vld [vmem:[%s3409_s6 + $0x48] sm:$0xff] }
 0x257   :  { %2802 = vtanh.f32 %v563_v38  ;;  %v2250_v38 = vld [vmem:[%s3409_s6 + $0x58] sm:$0xff] }
 0x258   :  { %2804 = vtanh.f32 %v566_v39  ;;  %v2249_v39 = vld [vmem:[%s3409_s6 + $0x50] sm:$0xff] }
 0x259   :  { %2806 = vtanh.f32 %v564_v40  ;;  %v774_v40 = vadd.s32 4294967294, %v3040_v45 }
 0x25b   :  { %vm775_vm7 = vcmp.ge.s32.totalorder %v774_v40, 0 }
 0x25c   :  { %v2793_v41 = vpop.eup %2792  ;;  %vm3178_vm8 = vmpackc.low %vm775_vm7, %vm775_vm7 }
 0x25d   :  { %v2795_v42 = vpop.eup %2794  ;;  %v589_v43 = vadd.f32 1.0, %v2793_v41 }
 0x25e   :  { %v2797_v44 = vpop.eup %2796  ;;  %v587_v46 = vadd.f32 1.0, %v2795_v42 }
 0x25f   :  { %v2799_v47 = vpop.eup %2798  ;;  %2808 = vrcp.f32 %v589_v43  ;;  %v590_v48 = vadd.f32 1.0, %v2797_v44  ;;  %v1006_v43 = vadd.s32 2, %v3040_v45 }
 0x260   :  { %2810 = vrcp.f32 %v587_v46  ;;  %v588_v49 = vadd.f32 1.0, %v2799_v47  ;;  %v2801_v50 = vpop.eup %2800 }
 0x261   :  { %2812 = vrcp.f32 %v590_v48  ;;  %v2803_v51 = vpop.eup %2802  ;;  %vm1008_vm9 = vcmp.lt.s32.totalorder %v1006_v43, 16 }
 0x262   :  { %2814 = vrcp.f32 %v588_v49  ;;  %v2805_v52 = vpop.eup %2804  ;;  %vm2217_vm10 = vmpackc.low %vm1008_vm9, %vm1008_vm9 }
 0x263   :  { %v2807_v53 = vpop.eup %2806 }
 0x269   :  { %v2809_v54 = vpop.eup %2808 }
 0x26a   :  { %v2811_v55 = vpop.eup %2810  ;;  %v601_v56 = vmul.f32 %v2809_v54, %v2801_v50 }
 0x26b   :  { %v2813_v57 = vpop.eup %2812  ;;  %v599_v58 = vmul.f32 %v2811_v55, %v2803_v51 }
 0x26c   :  { %v2815_v59 = vpop.eup %2814  ;;  %v602_v60 = vmul.f32 %v2813_v57, %v2805_v52 }
 0x26d   :  { %v600_v61 = vmul.f32 %v2815_v59, %v2807_v53  ;;  %v2765_v59 = vld [vmem:[%s3406_s3 + $0x68] sm:$0xff]  }
 0x26e   :  { %v612_v62 = vpack.c.bf16 %v602_v60, %v601_v56  ;;  %v2766_v60 = vld [vmem:[%s3406_s3 + $0x70] sm:$0xff]  }
 0x26f   :  { %v611_v63 = vpack.c.bf16 %v600_v61, %v599_v58 }
 0x271   :  { %2480 = vmatprep.subr.bf16.mxu0 %v611_v63 }
 0x272   :  { %2481 = vmatpush3.bf16.msra.mxu0 %v611_v63  ;;  %v2768_v63 = vld [vmem:[%s3406_s3 + $0xa0] sm:$0xff]  }
 0x273   :  { %2482 = vmatprep.subr.bf16.mxu0 %v612_v62 }
 0x276   :  { %2483 = vmatpush3.bf16.msra.mxu0 %v612_v62  ;;  %v2767_v62 = vld [vmem:[%s3406_s3 + $0x78] sm:$0xff]  }
 0x279   :  { %2485 = vmatmul.mubr.msk.bf16.vlgmr.msra.gmra.mrb[4].mxu0 %vm208_vm2, %v2757_v0  ;;  %v2769_v0 = vld [vmem:[%s3406_s3 + $0xa8] sm:$0xff]  }
 0x27a   :  { %2488 = vmatprep.mubr.msk.bf16.mxu0 %vm208_vm2, %v2758_v1  ;;  %v2770_v1 = vld [vmem:[%s3406_s3 + $0xb0] sm:$0xff]  }
 0x281   :  { %2489 = vmatmul.mubr.msk.bf16.gmra.mrb[8].mxu0 %vm208_vm2, %v2759_v2  ;;  %v2771_v2 = vld [vmem:[%s3406_s3 + $0xb8] sm:$0xff]  }
 0x282   :  { %2496 = vmatprep.mubr.msk.bf16.mxu0 %vm208_vm2, %v2760_v3  ;;  %v2772_v3 = vld [vmem:[%s3408_s5 + $0x20] sm:$0xff]  }
 0x34c   :  { %v2486_v7 = vpop.f32.mrb[4].mxu0 }
 0x34d   :  { %v736_v8 = vadd.f32 %v2486_v7, %v634_v6  ;;  %v727_v9 = vpop.f32.mrb[5].mxu0 }
 0x34e   :  { %v728_v11 = vadd.f32 %v727_v9, %v624_v4  ;;  %v2487_v12 = vpop.f32.mrb[6].mxu0 }
 0x34f   :  { %v739_v13 = vadd.f32 %v2487_v12, %v639_v10  ;;  %v730_v14 = vpop.f32.mrb[7].mxu0  ;;  %v3105_v16 = vadd.f32 %v736_v8, %v2972_v18 }
 0x350   :  { %v731_v15 = vadd.f32 %v730_v14, %v629_v5  ;;  %v3111_v20 = vadd.f32 %v728_v11, %v2976_v21  ;;  %v2761_v21 = vld [vmem:[%s3406_s3 + $0x88] sm:$0xff]  }
 0x351   :  { %v3108_v17 = vadd.f32 %v739_v13, %v2974_v19  ;;  %v2232_v19 = vld [vmem:[%s3407_s4 + $0x68] sm:$0xff] }
 0x352   :  { %v3114_v23 = vadd.f32 %v731_v15, %v2978_v22  ;;  %v2231_v22 = vld [vmem:[%s3407_s4 + $0x60] sm:$0xff] }
 0x353   :  { %v2707_v24 = vpack.i.bf16 %v3108_v17, %v3105_v16  ;;  %v803_v18 = vpack.c.bf16 %v3108_v17, %v3105_v16 }
 0x354   :  { %v2702_v25 = vpack.i.bf16 %v3114_v23, %v3111_v20  ;;  %v802_v26 = vpack.c.bf16 %v3114_v23, %v3111_v20 }
 0x355   :  { %2708 = vrot.lane.b32.xlu1 %v2707_v24, %s2881_s23 }
 0x356   :  { %2703 = vrot.lane.b32.xlu0 %v2702_v25, %s2881_s23  ;;  %2492 = vmatprep.subr.bf16.mxu0 %v802_v26 }
 0x357   :  { %2493 = vmatpush3.bf16.msra.mxu0 %v802_v26 }
 0x358   :  { %2494 = vmatprep.subr.bf16.mxu0 %v803_v18 }
 0x359   :  { %2718 = vrot.lane.b32.xlu1 %v2707_v24, %s2882_s24 }
 0x35a   :  { %2713 = vrot.lane.b32.xlu0 %v2702_v25, %s2882_s24 }
 0x35b   :  { %2495 = vmatpush3.bf16.msra.mxu0 %v803_v18 }
 0x35d   :  { %1166 = vperm.xlu1 %2681, %v2232_v19  }
 0x35e   :  { %1161 = vperm.xlu0 %2680, %v2231_v22   ;;  %2497 = vmatmul.mubr.msk.bf16.vlgmr.msra.gmra.mrb[12].mxu0 %vm208_vm2, %v2761_v21 }
 0x35f   :  { %2500 = vmatprep.mubr.msk.bf16.mxu0 %vm208_vm2, %v2762_v27 }
 0x361   :  { %1176 = vperm.xlu1 %2681, %v2234_v28  }
 0x362   :  { %1171 = vperm.xlu0 %2680, %v2233_v29  }
 0x365   :  { %1146 = vperm.xlu1 %2681, %v2228_v30  }
 0x366   :  { %1141 = vperm.xlu0 %2680, %v2227_v32   ;;  %2501 = vmatmul.mubr.msk.bf16.gmra.mrb[16].mxu0 %vm208_vm2, %v2763_v31 }
 0x367   :  { %2508 = vmatprep.mubr.msk.bf16.mxu0 %vm208_vm2, %v2764_v33 }
 0x369   :  { %1156 = vperm.xlu1 %2681, %v2230_v34  }
 0x36a   :  { %1151 = vperm.xlu0 %2680, %v2229_v35  }
 0x36d   :  { %1246 = vperm.xlu1 %2681, %v2248_v36  }
 0x36e   :  { %1241 = vperm.xlu0 %2680, %v2247_v37  }
 0x371   :  { %1256 = vperm.xlu1 %2681, %v2250_v38  }
 0x372   :  { %1251 = vperm.xlu0 %2680, %v2249_v39  }
 0x3c7   :  { %v2709_v41 = vpop.permute.xlu1 %2708 }
 0x3c8   :  { %v2704_v42 = vpop.permute.xlu0 %2703  ;;  %v2711_v44 = vunpack.i.h.bf16 %v2709_v41  ;;  %v2710_v46 = vunpack.i.l.bf16 %v2709_v41 }
 0x3c9   :  { %v2706_v47 = vunpack.i.h.bf16 %v2704_v42  ;;  %v2705_v48 = vunpack.i.l.bf16 %v2704_v42 }
 0x3ca   :  { %v2199_v52 = vpack.c.bf16 %v2711_v44, %v2710_v46 }
 0x3cb   :  { %v2196_v50 = vpack.c.bf16 %v2706_v47, %v2705_v48  ;;  %v2719_v55 = vpop.permute.xlu1 %2718 }
 0x3cc   :  { %v2714_v51 = vpop.permute.xlu0 %2713  ;;  %v2721_v56 = vunpack.i.h.bf16 %v2719_v55  ;;  %v2720_v57 = vunpack.i.l.bf16 %v2719_v55 }
 0x3cd   :  { %v2716_v53 = vunpack.i.h.bf16 %v2714_v51  ;;  %v2715_v54 = vunpack.i.l.bf16 %v2714_v51  ;;  %2504 = vmatprep.subr.msk.bf16.mxu0 %vm3178_vm8, %v2196_v50 }
 0x3ce   :  { %2505 = vmatpush3.bf16.msk.msra.mxu0 %vm3178_vm8, %v2196_v50  ;;  %v2221_v61 = vpack.c.bf16 %v2721_v56, %v2720_v57 }
 0x3cf   :  { %2506 = vmatprep.subr.msk.bf16.mxu0 %vm3178_vm8, %v2199_v52  ;;  %v2218_v58 = vpack.c.bf16 %v2716_v53, %v2715_v54 }
 0x3d2   :  { %2507 = vmatpush3.bf16.msk.msra.mxu0 %vm3178_vm8, %v2199_v52 }
 0x3d3   :  { %2516 = vmatprep.subr.msk.bf16.mxu0 %vm2217_vm10, %v2218_v58 }
 0x3d5   :  { %2509 = vmatmul.mubr.msk.bf16.vlgmr.msra.gmra.mrb[12].mxu0 %vm208_vm2, %v2765_v59  ;;  %v2773_v59 = vld [vmem:[%s3408_s5 + $0x28] sm:$0xff]  }
 0x3d6   :  { %2517 = vmatpush3.bf16.msk.msra.mxu0 %vm2217_vm10, %v2218_v58  ;;  %2512 = vmatprep.mubr.msk.bf16.mxu0 %vm208_vm2, %v2766_v60  ;;  %v2774_v60 = vld [vmem:[%s3406_s3 + $0xe0] sm:$0xff]  }
 0x3d7   :  { %2518 = vmatprep.subr.msk.bf16.mxu0 %vm2217_vm10, %v2221_v61  ;;  %2544 = vmatprep.mubr.msk.bf16.mxu1 %vm208_vm2, %v2774_v60  ;;  %v2779_v60 = vld [vmem:[%s3406_s3 + $0xc8] sm:$0xff]  }
 0x3da   :  { %2519 = vmatpush3.bf16.msk.msra.mxu0 %vm2217_vm10, %v2221_v61 }
 0x3dc   :  { %v1167_v6 = vpop.permute.xlu1 %1166 }
 0x3dd   :  { %2513 = vmatmul.mubr.msk.bf16.gmra.mrb[16].mxu0 %vm208_vm2, %v2767_v62  ;;  %v1162_v4 = vpop.permute.xlu0 %1161 }
 0x3de   :  { %2520 = vmatprep.mubr.msk.bf16.mxu0 %vm208_vm2, %v2768_v63 }
 0x3e0   :  { %v1177_v11 = vpop.permute.xlu1 %1176 }
 0x3e1   :  { %v1172_v10 = vpop.permute.xlu0 %1171 }
 0x3e4   :  { %v1147_v27 = vpop.permute.xlu1 %1146 }
 0x3e5   :  { %2521 = vmatmul.mubr.msk.bf16.vlgmr.msra.gmra.mrb[12].mxu0 %vm208_vm2, %v2769_v0  ;;  %v1142_v25 = vpop.permute.xlu0 %1141 }
 0x3e6   :  { %2524 = vmatprep.mubr.msk.bf16.mxu0 %vm208_vm2, %v2770_v1 }
 0x3e8   :  { %v1157_v32 = vpop.permute.xlu1 %1156 }
 0x3e9   :  { %v1152_v30 = vpop.permute.xlu0 %1151 }
 0x3ec   :  { %v1247_v62 = vpop.permute.xlu1 %1246 }
 0x3ed   :  { %2525 = vmatmul.mubr.msk.bf16.gmra.mrb[16].mxu0 %vm208_vm2, %v2771_v2  ;;  %v1242_v61 = vpop.permute.xlu0 %1241 }
 0x3ee   :  { %2532 = vmatprep.mubr.msk.bf16.mxu0 %vm208_vm2, %v2772_v3 }
 0x3f0   :  { %v1257_v3 = vpop.permute.xlu1 %1256 }
 0x3f1   :  { %v1252_v63 = vpop.permute.xlu0 %1251 }
 0x4b8   :  { %v2522_v5 = vpop.f32.mrb[12].mxu0 }
 0x4b9   :  { %v1091_v7 = vpop.f32.mrb[13].mxu0  ;;  %v1181_v31 = vadd.f32 %v2522_v5, %v1152_v30  ;;  %v617_v30 = vld [vmem:[%s3409_s6 + $0x20] sm:$0xff] }
 0x4ba   :  { %v2523_v8 = vpop.f32.mrb[14].mxu0  ;;  %v1179_v33 = vadd.f32 %v1142_v25, %v1091_v7  ;;  %v2330_v25 = vld [vmem:[%s3407_s4 + $0xb8] sm:$0xff] }
 0x4bb   :  { %v1094_v9 = vpop.f32.mrb[15].mxu0  ;;  %v1182_v34 = vadd.f32 %v2523_v8, %v1157_v32  ;;  %v2251_v32 = vld [vmem:[%s3409_s6 + $0x60] sm:$0xff] }
 0x4bc   :  { %v1180_v35 = vadd.f32 %v1147_v27, %v1094_v9  ;;  %v2326_v27 = vld [vmem:[%s3407_s4 + $0x98] sm:$0xff] }
 0x4c0   :  { %v2526_v12 = vpop.f32.mrb[16].mxu0 }
 0x4c1   :  { %v1185_v13 = vadd.f32 %v2526_v12, %v1172_v10  ;;  %v1107_v14 = vpop.f32.mrb[17].mxu0 }
 0x4c2   :  { %v1183_v15 = vadd.f32 %v1162_v4, %v1107_v14  ;;  %v2527_v24 = vpop.f32.mrb[18].mxu0 }
 0x4c3   :  { %v2237_v26 = vmul.f32 -1.442695, %v1185_v13  ;;  %v1186_v18 = vadd.f32 %v2527_v24, %v1177_v11  ;;  %v1110_v19 = vpop.f32.mrb[19].mxu0 }
 0x4c4   :  { %v2235_v21 = vmul.f32 -1.442695, %v1183_v15  ;;  %v1184_v22 = vadd.f32 %v1167_v6, %v1110_v19  ;;  %v2777_v19 = vld [vmem:[%s3406_s3 + $0xf8] sm:$0xff]  }
 0x4c5   :  { %2816 = vpow2.f32 %v2237_v26  ;;  %v2238_v28 = vmul.f32 -1.442695, %v1186_v18  ;;  %v2329_v26 = vld [vmem:[%s3407_s4 + $0xb0] sm:$0xff]  ;;  %v2324_v18 = vld [vmem:[%s3407_s4 + $0x88] sm:$0xff] }
 0x4c6   :  { %2818 = vpow2.f32 %v2235_v21  ;;  %v2236_v29 = vmul.f32 -1.442695, %v1184_v22  ;;  %v2323_v21 = vld [vmem:[%s3407_s4 + $0x80] sm:$0xff] }
 0x4c7   :  { %2820 = vpow2.f32 %v2238_v28  ;;  %v2778_v22 = vld [vmem:[%s3406_s3 + $0xc0] sm:$0xff]   ;;  %v2325_v28 = vld [vmem:[%s3407_s4 + $0x90] sm:$0xff] }
 0x4c8   :  { %2822 = vpow2.f32 %v2236_v29  ;;  %v618_v29 = vld [vmem:[%s3409_s6 + $0x28] sm:$0xff] }
 0x4c9   :  { %2824 = vtanh.f32 %v1181_v31  ;;  %v2252_v31 = vld [vmem:[%s3409_s6 + $0x68] sm:$0xff] }
 0x4ca   :  { %2826 = vtanh.f32 %v1179_v33  ;;  %v2344_v33 = vld [vmem:[%s3409_s6 + $0x88] sm:$0xff] }
 0x4cb   :  { %2828 = vtanh.f32 %v1182_v34  ;;  %v2343_v34 = vld [vmem:[%s3409_s6 + $0x80] sm:$0xff] }
 0x4cc   :  { %2830 = vtanh.f32 %v1180_v35  ;;  %v620_v35 = vld [vmem:[%s3409_s6 + $0x38] sm:$0xff] }
 0x4cf   :  { %v2817_v36 = vpop.eup %2816 }
 0x4d0   :  { %v2819_v37 = vpop.eup %2818  ;;  %v1205_v38 = vadd.f32 1.0, %v2817_v36  ;;  %v619_v36 = vld [vmem:[%s3409_s6 + $0x30] sm:$0xff] }
 0x4d1   :  { %v2821_v39 = vpop.eup %2820  ;;  %v1203_v40 = vadd.f32 1.0, %v2819_v37  ;;  %v2254_v37 = vld [vmem:[%s3409_s6 + $0x78] sm:$0xff] }
 0x4d2   :  { %v2823_v41 = vpop.eup %2822  ;;  %2832 = vrcp.f32 %v1205_v38  ;;  %v1206_v42 = vadd.f32 1.0, %v2821_v39  ;;  %v2253_v38 = vld [vmem:[%s3409_s6 + $0x70] sm:$0xff]  ;;  %v2346_v39 = vld [vmem:[%s3409_s6 + $0x98] sm:$0xff] }
 0x4d3   :  { %2834 = vrcp.f32 %v1203_v40  ;;  %v1204_v43 = vadd.f32 1.0, %v2823_v41  ;;  %v2825_v44 = vpop.eup %2824  ;;  %v2345_v40 = vld [vmem:[%s3409_s6 + $0x90] sm:$0xff]  ;;  %v1993_v41 = vld [vmem:[%s3411_s8] sm:$0xf] }
 0x4d4   :  { %2836 = vrcp.f32 %v1206_v42  ;;  %v2827_v46 = vpop.eup %2826  ;;  %v1392_v42 = vadd.s32 4294967292, %v3040_v45 }
 0x4d5   :  { %2838 = vrcp.f32 %v1204_v43  ;;  %v2829_v47 = vpop.eup %2828 }
 0x4d6   :  { %v2831_v48 = vpop.eup %2830  ;;  %vm1393_vm11 = vcmp.ge.s32.totalorder %v1392_v42, 0 }
 0x4d7   :  { %vm3315_vm12 = vmpackc.low %vm1393_vm11, %vm1393_vm11 }
 0x4dc   :  { %v2833_v49 = vpop.eup %2832 }
 0x4dd   :  { %v2835_v50 = vpop.eup %2834  ;;  %v1217_v51 = vmul.f32 %v2833_v49, %v2825_v44 }
 0x4de   :  { %v2837_v52 = vpop.eup %2836  ;;  %v1215_v53 = vmul.f32 %v2835_v50, %v2827_v46  ;;  %v1624_v46 = vadd.s32 4, %v3040_v45 }
 0x4df   :  { %v2839_v54 = vpop.eup %2838  ;;  %v1218_v55 = vmul.f32 %v2837_v52, %v2829_v47 }
 0x4e0   :  { %v1216_v56 = vmul.f32 %v2839_v54, %v2831_v48  ;;  %vm1626_vm13 = vcmp.lt.s32.totalorder %v1624_v46, 16 }
 0x4e1   :  { %v1229_v57 = vpack.c.bf16 %v1218_v55, %v1217_v51  ;;  %vm2313_vm14 = vmpackc.low %vm1626_vm13, %vm1626_vm13 }
 0x4e2   :  { %v1228_v58 = vpack.c.bf16 %v1216_v56, %v1215_v53 }
 0x4e4   :  { %2528 = vmatprep.subr.bf16.mxu0 %v1228_v58 }
 0x4e5   :  { %2529 = vmatpush3.bf16.msra.mxu0 %v1228_v58 }
 0x4e6   :  { %2530 = vmatprep.subr.bf16.mxu0 %v1229_v57 }
 0x4e9   :  { %2531 = vmatpush3.bf16.msra.mxu0 %v1229_v57 }
 0x4ec   :  { %2533 = vmatmul.mubr.msk.bf16.vlgmr.msra.gmra.mrb[20].mxu0 %vm208_vm2, %v2773_v59 }
 0x5bf   :  { %v2534_v0 = vpop.f32.mrb[20].mxu0 }
 0x5c0   :  { %v1354_v1 = vadd.f32 %v2534_v0, %v1252_v63  ;;  %v1345_v2 = vpop.f32.mrb[21].mxu0  ;;  %v2781_v63 = vld [vmem:[%s3406_s3 + $0xd8] sm:$0xff]   ;;  %v2782_v0 = vld [vmem:[%s3406_s3 + $0x100] sm:$0xff]  }
 0x5c1   :  { %v1346_v4 = vadd.f32 %v1345_v2, %v1242_v61  ;;  %v2535_v5 = vpop.f32.mrb[22].mxu0  ;;  %v2780_v61 = vld [vmem:[%s3406_s3 + $0xd0] sm:$0xff]  }
 0x5c2   :  { %v1357_v6 = vadd.f32 %v2535_v5, %v1257_v3  ;;  %v1348_v7 = vpop.f32.mrb[23].mxu0  ;;  %v1378_v9 = vadd.f32 %v1354_v1, %v3105_v16  ;;  %v2328_v16 = vld [vmem:[%s3407_s4 + $0xa8] sm:$0xff]  ;;  %v2784_v2 = vld [vmem:[%s3406_s3 + $0x110] sm:$0xff]   ;;  %v2785_v3 = vld [vmem:[%s3406_s3 + $0x118] sm:$0xff]  }
 0x5c3   :  { %v1349_v8 = vadd.f32 %v1348_v7, %v1247_v62  ;;  %v1376_v11 = vadd.f32 %v1346_v4, %v3111_v20  ;;  %v2327_v20 = vld [vmem:[%s3407_s4 + $0xa0] sm:$0xff]  ;;  %v2783_v1 = vld [vmem:[%s3406_s3 + $0x108] sm:$0xff]   ;;  %v2786_v4 = vld [vmem:[%s3408_s5 + $0x30] sm:$0xff]  }
 0x5c4   :  { %v1379_v10 = vadd.f32 %v1357_v6, %v3108_v17  ;;  %v2775_v17 = vld [vmem:[%s3406_s3 + $0xe8] sm:$0xff]   ;;  %v2787_v5 = vld [vmem:[%s3408_s5 + $0x38] sm:$0xff]   ;;  %2536 = vmatprep.mubr.msk.bf16.mxu0 %vm208_vm2, %v2786_v4  ;;  %v2788_v6 = vld [vmem:[%s3408_s5 + $0x40] sm:$0xff]  }
 0x5c5   :  { %v1377_v12 = vadd.f32 %v1349_v8, %v3114_v23  ;;  %v2776_v23 = vld [vmem:[%s3406_s3 + $0xf0] sm:$0xff]   ;;  %2537 = vmatmul.mubr.msk.bf16.gmra.mrb[8].mxu0 %vm208_vm2, %v2787_v5 }
 0x5c6   :  { %v2727_v13 = vpack.i.bf16 %v1379_v10, %v1378_v9  ;;  %v1421_v14 = vpack.c.bf16 %v1379_v10, %v1378_v9  ;;  %2580 = vmatprep.mubr.msk.bf16.mxu0 %vm208_vm2, %v2788_v6 }
 0x5c7   :  { %v2722_v15 = vpack.i.bf16 %v1377_v12, %v1376_v11  ;;  %v1420_v24 = vpack.c.bf16 %v1377_v12, %v1376_v11 }
 0x5c8   :  { %2728 = vrot.lane.b32.xlu1 %v2727_v13, %s2883_s11 }
 0x5c9   :  { %2723 = vrot.lane.b32.xlu0 %v2722_v15, %s2883_s11  ;;  %2540 = vmatprep.subr.bf16.mxu1 %v1420_v24 }
 0x5ca   :  { %2541 = vmatpush3.bf16.msra.mxu1 %v1420_v24 }
 0x5cb   :  { %2542 = vmatprep.subr.bf16.mxu1 %v1421_v14 }
 0x5cc   :  { %2738 = vrot.lane.b32.xlu1 %v2727_v13, %s2884_s12 }
 0x5cd   :  { %2733 = vrot.lane.b32.xlu0 %v2722_v15, %s2884_s12 }
 0x5ce   :  { %2543 = vmatpush3.bf16.msra.mxu1 %v1421_v14 }
 0x5d0   :  { %1784 = vperm.xlu1 %2681, %v2328_v16  }
 0x5d1   :  { %1779 = vperm.xlu0 %2680, %v2327_v20   ;;  %2545 = vmatmul.mubr.msk.bf16.vlgmr.msra.gmra.mrb[8].mxu1 %vm208_vm2, %v2775_v17 }
 0x5d2   :  { %2548 = vmatprep.mubr.msk.bf16.mxu1 %vm208_vm2, %v2776_v23 }
 0x5d4   :  { %1794 = vperm.xlu1 %2681, %v2330_v25  }
 0x5d5   :  { %1789 = vperm.xlu0 %2680, %v2329_v26  }
 0x5d8   :  { %1764 = vperm.xlu1 %2681, %v2324_v18  }
 0x5d9   :  { %1759 = vperm.xlu0 %2680, %v2323_v21   ;;  %2549 = vmatmul.mubr.msk.bf16.gmra.mrb[12].mxu1 %vm208_vm2, %v2777_v19 }
 0x5da   :  { %2556 = vmatprep.mubr.msk.bf16.mxu1 %vm208_vm2, %v2778_v22 }
 0x5dc   :  { %1774 = vperm.xlu1 %2681, %v2326_v27  }
 0x5dd   :  { %1769 = vperm.xlu0 %2680, %v2325_v28  }
 0x5e0   :  { %648 = vperm.xlu1 %2681, %v618_v29  }
 0x5e1   :  { %643 = vperm.xlu0 %2680, %v617_v30  }
 0x5e4   :  { %1266 = vperm.xlu1 %2681, %v2252_v31  }
 0x5e5   :  { %1261 = vperm.xlu0 %2680, %v2251_v32  }
 0x5e8   :  { %1864 = vperm.xlu1 %2681, %v2344_v33  }
 0x5e9   :  { %1859 = vperm.xlu0 %2680, %v2343_v34  }
 0x5ec   :  { %658 = vperm.xlu1 %2681, %v620_v35  }
 0x5ed   :  { %653 = vperm.xlu0 %2680, %v619_v36  }
 0x5f0   :  { %1276 = vperm.xlu1 %2681, %v2254_v37  }
 0x5f1   :  { %1271 = vperm.xlu0 %2680, %v2253_v38  }
 0x5f4   :  { %1874 = vperm.xlu1 %2681, %v2346_v39  }
 0x5f5   :  { %1869 = vperm.xlu0 %2680, %v2345_v40  }
 0x5f9   :  { %1996 = vperm.xlu0 %2680, %v1993_v41  }
 0x63a   :  { %v2729_v43 = vpop.permute.xlu1 %2728 }
 0x63b   :  { %v2724_v44 = vpop.permute.xlu0 %2723  ;;  %v2731_v47 = vunpack.i.h.bf16 %v2729_v43  ;;  %v2730_v48 = vunpack.i.l.bf16 %v2729_v43 }
 0x63c   :  { %v2726_v49 = vunpack.i.h.bf16 %v2724_v44  ;;  %v2725_v50 = vunpack.i.l.bf16 %v2724_v44 }
 0x63d   :  { %v2295_v54 = vpack.c.bf16 %v2731_v47, %v2730_v48 }
 0x63e   :  { %v2292_v52 = vpack.c.bf16 %v2726_v49, %v2725_v50  ;;  %v2739_v57 = vpop.permute.xlu1 %2738 }
 0x63f   :  { %v2734_v53 = vpop.permute.xlu0 %2733  ;;  %v2741_v45 = vunpack.i.h.bf16 %v2739_v57  ;;  %v2740_v58 = vunpack.i.l.bf16 %v2739_v57 }
 0x640   :  { %v2736_v55 = vunpack.i.h.bf16 %v2734_v53  ;;  %v2735_v56 = vunpack.i.l.bf16 %v2734_v53  ;;  %2552 = vmatprep.subr.msk.bf16.mxu1 %vm3315_vm12, %v2292_v52 }
 0x641   :  { %2553 = vmatpush3.bf16.msk.msra.mxu1 %vm3315_vm12, %v2292_v52  ;;  %v2317_v62 = vpack.c.bf16 %v2741_v45, %v2740_v58  ;;  %v2789_v45 = vld [vmem:[%s3408_s5 + $0x48] sm:$0xff]   ;;  %v2885_v58 = vmov 0.0  }
 0x642   :  { %2554 = vmatprep.subr.msk.bf16.mxu1 %vm3315_vm12, %v2295_v54  ;;  %v2314_v59 = vpack.c.bf16 %v2736_v55, %v2735_v56 }
 0x645   :  { %2555 = vmatpush3.bf16.msk.msra.mxu1 %vm3315_vm12, %v2295_v54 }
 0x646   :  { %2564 = vmatprep.subr.msk.bf16.mxu1 %vm2313_vm14, %v2314_v59 }
 0x648   :  { %2557 = vmatmul.mubr.msk.bf16.vlgmr.msra.gmra.mrb[8].mxu1 %vm208_vm2, %v2779_v60 }
 0x649   :  { %2565 = vmatpush3.bf16.msk.msra.mxu1 %vm2313_vm14, %v2314_v59  ;;  %2560 = vmatprep.mubr.msk.bf16.mxu1 %vm208_vm2, %v2780_v61 }
 0x64a   :  { %2566 = vmatprep.subr.msk.bf16.mxu1 %vm2313_vm14, %v2317_v62 }
 0x64d   :  { %2567 = vmatpush3.bf16.msk.msra.mxu1 %vm2313_vm14, %v2317_v62 }
 0x64e   :  { %2588 = vmatprep.subr.bf16.mxu1 %v2885_v58 }
 0x64f   :  { %v1785_v9 = vpop.permute.xlu1 %1784 }
 0x650   :  { %2561 = vmatmul.mubr.msk.bf16.gmra.mrb[12].mxu1 %vm208_vm2, %v2781_v63  ;;  %v1780_v7 = vpop.permute.xlu0 %1779 }
 0x651   :  { %2568 = vmatprep.mubr.msk.bf16.mxu1 %vm208_vm2, %v2782_v0 }
 0x653   :  { %v1795_v14 = vpop.permute.xlu1 %1794 }
 0x654   :  { %v1790_v13 = vpop.permute.xlu0 %1789 }
 0x657   :  { %v1765_v22 = vpop.permute.xlu1 %1764 }
 0x658   :  { %2569 = vmatmul.mubr.msk.bf16.vlgmr.msra.gmra.mrb[8].mxu1 %vm208_vm2, %v2783_v1  ;;  %v1760_v23 = vpop.permute.xlu0 %1759 }
 0x659   :  { %2572 = vmatprep.mubr.msk.bf16.mxu1 %vm208_vm2, %v2784_v2 }
 0x65b   :  { %v1775_v31 = vpop.permute.xlu1 %1774 }
 0x65c   :  { %v1770_v29 = vpop.permute.xlu0 %1769 }
 0x65f   :  { %v649_v59 = vpop.permute.xlu1 %648 }
 0x660   :  { %2573 = vmatmul.mubr.msk.bf16.gmra.mrb[12].mxu1 %vm208_vm2, %v2785_v3  ;;  %v644_v60 = vpop.permute.xlu0 %643 }
 0x661   :  { %2592 = vmatprep.mubr.msk.bf16.mxu1 %vm2886_vm15, %v2885_v58 }
 0x663   :  { %v1267_v61 = vpop.permute.xlu1 %1266 }
 0x664   :  { %v1262_v62 = vpop.permute.xlu0 %1261 }
 0x667   :  { %v1865_v63 = vpop.permute.xlu1 %1864 }
 0x668   :  { %v1860_v0 = vpop.permute.xlu0 %1859 }
 0x66b   :  { %v659_v1 = vpop.permute.xlu1 %658 }
 0x66c   :  { %v654_v2 = vpop.permute.xlu0 %653 }
 0x66f   :  { %v1277_v3 = vpop.permute.xlu1 %1276 }
 0x670   :  { %v1272_v4 = vpop.permute.xlu0 %1271 }
 0x673   :  { %v1875_v5 = vpop.permute.xlu1 %1874 }
 0x674   :  { %v1870_v6 = vpop.permute.xlu0 %1869 }
 0x72b   :  { %v2570_v8 = vpop.f32.mrb[8].mxu1 }
 0x72c   :  { %v1709_v10 = vpop.f32.mrb[9].mxu1  ;;  %v1799_v30 = vadd.f32 %v2570_v8, %v1770_v29  ;;  %v2596_v8 = vadd.f32 %v1272_v4, %v654_v2 }
 0x72d   :  { %v2571_v11 = vpop.f32.mrb[10].mxu1  ;;  %v1797_v32 = vadd.f32 %v1760_v23, %v1709_v10  ;;  %v2599_v10 = vadd.f32 %v1262_v62, %v644_v60 }
 0x72e   :  { %v1712_v12 = vpop.f32.mrb[11].mxu1  ;;  %v1800_v33 = vadd.f32 %v2571_v11, %v1775_v31 }
 0x72f   :  { %v1798_v34 = vadd.f32 %v1765_v22, %v1712_v12  ;;  %v2790_v22 = vld [vmem:[%s3408_s5 + $0x50] sm:$0xff]  }
 0x733   :  { %v2574_v15 = vpop.f32.mrb[12].mxu1 }
 0x734   :  { %v1803_v24 = vadd.f32 %v2574_v15, %v1790_v13  ;;  %v1725_v16 = vpop.f32.mrb[13].mxu1  ;;  %v2597_v13 = vadd.f32 %v2596_v8, %v1870_v6 }
 0x735   :  { %v1801_v17 = vadd.f32 %v1780_v7, %v1725_v16  ;;  %v2575_v20 = vpop.f32.mrb[14].mxu1  ;;  %v2602_v7 = vadd.f32 %v1277_v3, %v659_v1 }
 0x736   :  { %v2333_v25 = vmul.f32 -1.442695, %v1803_v24  ;;  %v1804_v26 = vadd.f32 %v2575_v20, %v1795_v14  ;;  %v1728_v18 = vpop.f32.mrb[15].mxu1  ;;  %v2600_v24 = vadd.f32 %v2599_v10, %v1860_v0 }
 0x737   :  { %v2331_v19 = vmul.f32 -1.442695, %v1801_v17  ;;  %v1802_v21 = vadd.f32 %v1785_v9, %v1728_v18  ;;  %v2605_v9 = vadd.f32 %v1267_v61, %v649_v59  ;;  %v2603_v12 = vadd.f32 %v2602_v7, %v1875_v5 }
 0x738   :  { %2840 = vpow2.f32 %v2333_v25  ;;  %v2334_v27 = vmul.f32 -1.442695, %v1804_v26 }
 0x739   :  { %2842 = vpow2.f32 %v2331_v19  ;;  %v2332_v28 = vmul.f32 -1.442695, %v1802_v21  ;;  %v2606_v15 = vadd.f32 %v2605_v9, %v1865_v63  ;;  %v1990_v21 = vld [vmem:[%s3410_s7] sm:$0x3]  ;;  %s2887_s7 = smov 112  }
 0x73a   :  { %2844 = vpow2.f32 %v2334_v27  ;;  %v2791_v27 = vld [vmem:[%s3408_s5 + $0x58] sm:$0xff]  }
 0x73b   :  { %2846 = vpow2.f32 %v2332_v28  ;;  %v1997_v28 = vpop.permute.xlu0 %1996 }
 0x73c   :  { %2848 = vtanh.f32 %v1799_v30 }
 0x73d   :  { %2850 = vtanh.f32 %v1797_v32 }
 0x73e   :  { %2852 = vtanh.f32 %v1800_v33 }
 0x73f   :  { %2854 = vtanh.f32 %v1798_v34 }
 0x742   :  { %v2841_v35 = vpop.eup %2840 }
 0x743   :  { %v2843_v36 = vpop.eup %2842  ;;  %v1823_v37 = vadd.f32 1.0, %v2841_v35 }
 0x744   :  { %v2845_v38 = vpop.eup %2844  ;;  %v1821_v39 = vadd.f32 1.0, %v2843_v36 }
 0x745   :  { %v2847_v40 = vpop.eup %2846  ;;  %2856 = vrcp.f32 %v1823_v37  ;;  %v1824_v41 = vadd.f32 1.0, %v2845_v38  ;;  %v37_v38 = vld [vmem:[%s3403_s0 + $0x2] sm:$0x3] }
 0x746   :  { %2858 = vrcp.f32 %v1821_v39  ;;  %v1822_v42 = vadd.f32 1.0, %v2847_v40  ;;  %v2849_v43 = vpop.eup %2848 }
 0x747   :  { %2860 = vrcp.f32 %v1824_v41  ;;  %v2851_v44 = vpop.eup %2850 }
 0x748   :  { %2862 = vrcp.f32 %v1822_v42  ;;  %v2853_v46 = vpop.eup %2852 }
 0x749   :  { %v2855_v47 = vpop.eup %2854 }
 0x74f   :  { %v2857_v48 = vpop.eup %2856 }
 0x750   :  { %v2859_v49 = vpop.eup %2858  ;;  %v1835_v50 = vmul.f32 %v2857_v48, %v2849_v43 }
 0x751   :  { %v2861_v51 = vpop.eup %2860  ;;  %v1833_v52 = vmul.f32 %v2859_v49, %v2851_v44 }
 0x752   :  { %v2863_v53 = vpop.eup %2862  ;;  %v1836_v54 = vmul.f32 %v2861_v51, %v2853_v46 }
 0x753   :  { %v1834_v55 = vmul.f32 %v2863_v53, %v2855_v47 }
 0x754   :  { %v1847_v56 = vpack.c.bf16 %v1836_v54, %v1835_v50 }
 0x755   :  { %v1846_v57 = vpack.c.bf16 %v1834_v55, %v1833_v52 }
 0x757   :  { %2576 = vmatprep.subr.bf16.mxu0 %v1846_v57 }
 0x758   :  { %2577 = vmatpush3.bf16.msra.mxu0 %v1846_v57 }
 0x759   :  { %2578 = vmatprep.subr.bf16.mxu0 %v1847_v56 }
 0x75c   :  { %2579 = vmatpush3.bf16.msra.mxu0 %v1847_v56 }
 0x75f   :  { %2581 = vmatmul.mubr.msk.bf16.vlgmr.msra.gmra.mrb[8].mxu0 %vm208_vm2, %v2789_v45 }
 0x760   :  { %2584 = vmatprep.mubr.msk.bf16.mxu0 %vm208_vm2, %v2790_v22 }
 0x767   :  { %2585 = vmatmul.mubr.msk.bf16.gmra.mrb[24].mxu0 %vm208_vm2, %v2791_v27 }
 0x832   :  { %v2582_v11 = vpop.f32.mrb[8].mxu0 }
 0x833   :  { %v1959_v14 = vpop.f32.mrb[9].mxu0  ;;  %v2598_v17 = vadd.f32 %v2597_v13, %v2582_v11 }
 0x834   :  { %v2583_v16 = vpop.f32.mrb[10].mxu0  ;;  %v2601_v25 = vadd.f32 %v2600_v24, %v1959_v14 }
 0x835   :  { %v2604_v20 = vadd.f32 %v2603_v12, %v2583_v16  ;;  %v1962_v23 = vpop.f32.mrb[11].mxu0 }
 0x836   :  { %v2607_v26 = vadd.f32 %v2606_v15, %v1962_v23 }
 0x837   :  { %v1992_v18 = vpack.c.bf16 %v2604_v20, %v2598_v17 }
 0x838   :  { %v1991_v19 = vpack.c.bf16 %v2607_v26, %v2601_v25 }
 0x83a   :  { %2589 = vmatpush3.bf16.msra.mxu1 %v1991_v19  ;;  %v2586_v52 = vpop.f32.mrb[24].mxu0 }
 0x83b   :  { %2590 = vmatprep.subr.bf16.mxu1 %v2885_v58  ;;  %v1975_v53 = vpop.f32.mrb[25].mxu0 }
 0x83c   :  { %v2587_v54 = vpop.f32.mrb[26].mxu0 }
 0x83d   :  { %v1977_v55 = vpop.f32.mrb[27].mxu0 }
 0x83e   :  { %2591 = vmatpush3.bf16.msra.mxu1 %v1992_v18 }
 0x841   :  { %2593 = vmatmul.mubr.msk.bf16.vlgmr.msra.gmra.mrb[16].mxu1 %vm208_vm2, %v1990_v21 }
 0x914   :  { %v2036_v29 = vpop.f32.mrb[16].mxu1 }
 0x915   :  { %v2037_v30 = vadd.f32 %v2036_v29, %v1997_v28  ;;  %v2594_v31 = vpop.f32.mrb[17].mxu1 }
 0x916   :  { %v2039_v32 = vpop.f32.mrb[18].mxu1 }
 0x917   :  { %v2043_v33 = vmul.f32 1.442695, %v2037_v30  ;;  %v2052_v34 = vrot.slane %v2037_v30, 2  ;;  %v2595_v35 = vpop.f32.mrb[19].mxu1 }
 0x919   :  { %2864 = vpow2.f32 %v2043_v33  ;;  %2067 = vrot.lane.b32.xlu1 %v2052_v34, %s2887_s7  ;;  %v2055_v36 = vsel %vm2054_vm0, %v2052_v34, 0.0 }
 0x91a   :  { %2056 = vadd.xlane.f32.xlu0 %v2055_v36 }
 0x923   :  { %v2865_v37 = vpop.eup %2864 }
 0x924   :  { %v2046_v39 = vrot.slane %v2865_v37, 2 }
 0x926   :  { %v2048_v40 = vmul.f32 %v2046_v39, %v37_v38 }
 0x928   :  { %v2049_v41 = vadd.f32 %v2048_v40, %v2037_v30 }
 0x92a   :  { %2050 = vst [vmem:[%s3412_s9 + $0x2] sm:$0x3] %v2049_v41 }
 0x98b   :  { %v2068_v42 = vpop.permute.xlu1 %2067 }
 0x98c   :  { %v2070_v43 = vsel %vm2054_vm0, %v2068_v42, 0.0 }
 0x98d   :  { %2071 = vadd.xlane.f32.xlu1 %v2070_v43 }
 0x9a7   :  { %v2057_v44 = vpop.xlane.xlu0 %2056 }
 0x9a8   :  { %v2058_v46 = vrot.slane %v2057_v44, 4 }
 0x9aa   :  { %v2059_v47 = vadd.f32 %v2058_v46, %v2057_v44 }
 0x9ac   :  { %v2060_v48 = vrot.slane %v2059_v47, 2 }
 0x9ae   :  { %v2061_v49 = vadd.f32 %v2060_v48, %v2059_v47 }
 0x9b0   :  { %v2062_v50 = vrot.slane %v2061_v49, 1 }
 0x9b2   :  { %v2063_v51 = vadd.f32 %v2062_v50, %v2061_v49 }
 0x9b4   :  { %2665 = vpush %v2063_v51 }
 0x9e5   :  { %s2666_s0 = spop %2665 }
 0x9e6   :  { %2066 = sst [smem:[#allocation2]] %s2666_s0 }
 0xa1a   :  { %v2072_v56 = vpop.xlane.xlu1 %2071 }
 0xa1b   :  { %v2073_v57 = vrot.slane %v2072_v56, 4 }
 0xa1d   :  { %v2074_v45 = vadd.f32 %v2073_v57, %v2072_v56 }
 0xa1f   :  { %v2075_v58 = vrot.slane %v2074_v45, 2 }
 0xa21   :  { %v2076_v59 = vadd.f32 %v2075_v58, %v2074_v45 }
 0xa23   :  { %v2077_v60 = vrot.slane %v2076_v59, 1 }
 0xa25   :  { %v2078_v61 = vadd.f32 %v2077_v60, %v2076_v59 }
 0xa27   :  { %2667 = vpush %v2078_v61 }
 0xa58   :  { %s2668_s9 = spop %2667 }
 0xa59   :  { %2081 = sst [smem:[#allocation2 + $0x1]] %s2668_s9 }
 0xa5a   :  { %2875 = shalt.err (!%p2872_p2)
}
 0xa5b   :  { %s2888_s1 = smov [#allocation2]  }
 0xa5c   :  { %2091 = dma.smem_to_hbm %s2888_s1, 16, %s3413_s10, [#allocation3]  }
 0xa5d   :  { %2876 = dma.done.wait [#allocation3], 16  }
 0xa5e   :  { %2877 = vsyncadd [#allocation3], 4294967280 }
 0xa5f   :  { %2097 = sfence }
 0xa60   :  { %2098 = vsyncpa [#allocation3], 1 }

</bundles_post_ra>
